<compile_context>
chip_gen: v7x
topology: tpu7x:2x2x1
jax: 0.10.0
libtpu: 0.0.40
codegen_flags: <defaults>
</compile_context>

<pallas_src>
import functools
import math

import jax
import jax.numpy as jnp
from jax.experimental import pallas as pl
from jax.experimental.pallas import tpu as pltpu

BN_EPS = 1e-5
VMEM_LIMIT_BYTES = 48 * 1024 * 1024     # scoped-VMEM cap, safe on v5e/v6e/v7x
_A_TILE_BYTES = 4 * 1024 * 1024         # per-buffer cap for the activation tile


def _round_up(x, m):
    return (x + m - 1) // m * m


# ----------------------------------------------------------------------------
# Plain GEMM (+ folded BN + optional residual + ReLU) with whole-weight-resident
# N tiling: grid = (Mi, Nj) -- no K loop, no accumulator scratch.
# ----------------------------------------------------------------------------
def _gemm_bn_kernel(*refs, relu, has_res):
    if has_res:
        a_ref, b_ref, s_ref, c_ref, r_ref, o_ref = refs
    else:
        a_ref, b_ref, s_ref, c_ref, o_ref = refs
        r_ref = None
    y = jnp.dot(a_ref[...], b_ref[...], preferred_element_type=jnp.float32)
    y = y * s_ref[...] + c_ref[...]
    if has_res:
        y = y + r_ref[...].astype(jnp.float32)
    if relu:
        y = jnp.maximum(y, 0.0)
    o_ref[...] = y.astype(o_ref.dtype)


def _choose_tm(M, Kp):
    """Row tile for the plain GEMM.  Avoids M padding whenever possible."""
    cap = min(512, max(8, (_A_TILE_BYTES // (2 * Kp)) // 8 * 8))
    if M <= cap:
        t = _round_up(M, 16)
        return t, t
    for c in range(cap, 7, -8):          # largest multiple-of-8 divisor <= cap
        if M % c == 0:
            return c, M
    c = min(cap, 128)                    # rare fallback: pad M
    return c, _round_up(M, c)


def matmul_bn(a, b_p, s_p, c_p, *, relu, residual=None, out_dtype=jnp.bfloat16):
    """act((a @ b_p) * scale + bias (+ residual)) with padded N kept.

    a:        (M, K)   activations (K must match b_p rows up to zero padding)
    b_p:      (Kp, Np) bf16 pre-transposed / channel-padded weights
    s_p, c_p: (1, Np)  f32 folded-BN scale / bias (zero on padded columns)
    """
    M, K = a.shape
    Kp, Np = b_p.shape
    a = a.astype(jnp.bfloat16)
    if K != Kp:                           # only the 7x7 stem (147 -> 256)
        a = jnp.pad(a, ((0, 0), (0, Kp - K)))
    tm, Mp = _choose_tm(M, Kp)
    if Mp != M:
        a = jnp.pad(a, ((0, Mp - M), (0, 0)))
    has_res = residual is not None
    if has_res:
        r = residual.astype(jnp.bfloat16)
        if Mp != M:
            r = jnp.pad(r, ((0, Mp - M), (0, 0)))
    Mi = Mp // tm
    # If the M grid collapses to one block, split N in two so v7x megacore has
    # a parallel axis >= 2 (harmless on single-core v5e/v6e).
    tn = Np // 2 if (Mi == 1 and Np % 256 == 0) else Np
    Nj = Np // tn

    operands = [a, b_p, s_p, c_p]
    in_specs = [
        pl.BlockSpec((tm, Kp), lambda i, j: (i, 0)),
        pl.BlockSpec((Kp, tn), lambda i, j: (0, j)),
        pl.BlockSpec((1, tn), lambda i, j: (0, j)),
        pl.BlockSpec((1, tn), lambda i, j: (0, j)),
    ]
    if has_res:
        operands.append(r)
        in_specs.append(pl.BlockSpec((tm, tn), lambda i, j: (i, j)))

    bytes_accessed = (a.size * 2 + b_p.size * 2 + Np * 8 +
                      (r.size * 2 if has_res else 0) + Mp * Np * 2)
    out = pl.pallas_call(
        functools.partial(_gemm_bn_kernel, relu=relu, has_res=has_res),
        out_shape=jax.ShapeDtypeStruct((Mp, Np), out_dtype),
        grid_spec=pltpu.PrefetchScalarGridSpec(
            num_scalar_prefetch=0,
            grid=(Mi, Nj),
            in_specs=in_specs,
            out_specs=pl.BlockSpec((tm, tn), lambda i, j: (i, j)),
        ),
        compiler_params=pltpu.CompilerParams(
            dimension_semantics=("parallel", "parallel"),
            vmem_limit_bytes=VMEM_LIMIT_BYTES),
        cost_estimate=pl.CostEstimate(
            flops=2 * Mp * Kp * Np, transcendentals=0,
            bytes_accessed=int(bytes_accessed)),
    )(*operands)
    if Mp != M:
        out = out[:M]
    return out


# ----------------------------------------------------------------------------
# Implicit-GEMM 3x3 / stride-1 / pad-1 conv: im2col patches are built on-chip
# from two adjacent row blocks of the flattened padded activation.
# ----------------------------------------------------------------------------
def _conv3x3_kernel(a0_ref, a1_ref, b_ref, s_ref, c_ref, o_ref, *, relu, offs):
    tm = o_ref.shape[0]
    a = jnp.concatenate([a0_ref[...], a1_ref[...]], axis=0)            # (2tm, C)
    patch = jnp.concatenate([a[o:o + tm, :] for o in offs], axis=1)    # (tm, 9C)
    y = jnp.dot(patch, b_ref[...], preferred_element_type=jnp.float32)
    y = y * s_ref[...] + c_ref[...]
    if relu:
        y = jnp.maximum(y, 0.0)
    o_ref[...] = y.astype(o_ref.dtype)


def _choose_tm_conv(M_ext, Wp, Cin):
    min_tm = _round_up(2 * Wp + 2, 8)     # tap offsets must fit inside one block
    cap = max(min_tm, min(512, (_A_TILE_BYTES // (2 * Cin)) // 8 * 8))
    tm = min_tm
    for c in (512, 384, 256, 192, 128, 96, 64, 48, 32, 24, 16, 8):
        if c > cap or c < min_tm:
            continue
        if (-M_ext) % c <= max(M_ext // 5, 64):   # bound padded-row waste
            tm = c
            break
    return tm


def conv3x3_implicit(x, layer, *, relu):
    """3x3/s1/p1 Conv + folded BN (+ReLU), no HBM patch materialization.

    For every tap (di, dj) the needed input rows are the output rows shifted by
    the constant di*Wp + dj in the flattened padded activation, so the kernel
    reads row blocks i and i+1 of the SAME flat array and slices on-chip.
    """
    N, H, W, C = x.shape
    Hp, Wp = H + 2, W + 2
    M_ext = N * Hp * Wp
    Kb, Np = layer['B'].shape
    assert Kb == 9 * C
    tm = _choose_tm_conv(M_ext, Wp, C)
    Mi = pl.cdiv(M_ext, tm)
    Mp = Mi * tm
    xp = jnp.pad(x.astype(jnp.bfloat16), ((0, 0), (1, 1), (1, 1), (0, 0)))
    a_flat = jnp.pad(xp.reshape(M_ext, C), ((0, Mp + tm - M_ext), (0, 0)))
    offs = tuple(di * Wp + dj for di in range(3) for dj in range(3))

    out = pl.pallas_call(
        functools.partial(_conv3x3_kernel, relu=relu, offs=offs),
        out_shape=jax.ShapeDtypeStruct((Mp, Np), jnp.bfloat16),
        grid_spec=pltpu.PrefetchScalarGridSpec(
            num_scalar_prefetch=0,
            grid=(Mi,),
            in_specs=[
                pl.BlockSpec((tm, C), lambda i: (i, 0)),
                pl.BlockSpec((tm, C), lambda i: (i + 1, 0)),
                pl.BlockSpec((Kb, Np), lambda i: (0, 0)),   # weight resident
                pl.BlockSpec((1, Np), lambda i: (0, 0)),
                pl.BlockSpec((1, Np), lambda i: (0, 0)),
            ],
            out_specs=pl.BlockSpec((tm, Np), lambda i: (i, 0)),
        ),
        compiler_params=pltpu.CompilerParams(
            dimension_semantics=("parallel",),
            vmem_limit_bytes=VMEM_LIMIT_BYTES),
        cost_estimate=pl.CostEstimate(
            flops=2 * Mp * Kb * Np, transcendentals=0,
            bytes_accessed=int(a_flat.size * 4 + layer['B'].size * 2 + Mp * Np * 2)),
    )(a_flat, a_flat, layer['B'], layer['scale'], layer['bias'])
    return out[:M_ext].reshape(N, Hp, Wp, Np)[:, :H, :W, :]


# ----------------------------------------------------------------------------
# Pooling kernels / helpers
# ----------------------------------------------------------------------------
def _mean_reduce_kernel(x_ref, o_ref):
    o_ref[...] = jnp.mean(x_ref[...].astype(jnp.float32), axis=1)


def global_avg_pool(x):
    """(N, H, W, C) -> (N, C) global average (AdaptiveAvgPool2d(1))."""
    N, H, W, C = x.shape
    xr = x.reshape(N, H * W, C)
    tc = 128
    assert C % tc == 0
    return pl.pallas_call(
        _mean_reduce_kernel,
        out_shape=jax.ShapeDtypeStruct((N, C), jnp.float32),
        grid=(C // tc,),
        in_specs=[pl.BlockSpec((N, H * W, tc), lambda j: (0, 0, j))],
        out_specs=pl.BlockSpec((N, tc), lambda j: (0, j)),
        compiler_params=pltpu.CompilerParams(
            dimension_semantics=("parallel",)),
    )(xr)


def maxpool_3x3_s2(x):
    # TODO(synk): left to XLA's fused reduce_window (one read + one write);
    # a dedicated Pallas kernel would need strided sublane gathers in Mosaic.
    return jax.lax.reduce_window(
        x, jnp.array(-jnp.inf, x.dtype), jax.lax.max,
        window_dimensions=(1, 3, 3, 1),
        window_strides=(1, 2, 2, 1),
        padding=((0, 0), (1, 1), (1, 1), (0, 0)))


def im2col(x, kh, kw, stride, pad):
    """x: (N, H, W, C) -> patches (N, OH, OW, kh*kw, C)."""
    N, H, W, C = x.shape
    xp = jnp.pad(x, ((0, 0), (pad, pad), (pad, pad), (0, 0)))
    OH = (H + 2 * pad - kh) // stride + 1
    OW = (W + 2 * pad - kw) // stride + 1
    cols = []
    for i in range(kh):
        for j in range(kw):
            cols.append(xp[:, i:i + stride * (OH - 1) + 1:stride,
                           j:j + stride * (OW - 1) + 1:stride, :])
    return jnp.stack(cols, axis=3), OH, OW


# ----------------------------------------------------------------------------
# Conv + folded BN glue, bottleneck blocks, backbone
# ----------------------------------------------------------------------------
def conv_bn_act(x, layer, *, relu, residual=None):
    kh, kw, stride, pad = layer['kh'], layer['kw'], layer['stride'], layer['pad']
    N, H, W, C = x.shape
    if kh == 1 and kw == 1 and pad == 0:
        # TODO(synk): the stride-2 downsample slice is still an XLA strided
        # slice; the stride is non-affine in the flattened-M BlockSpec index.
        xs = x[:, ::stride, ::stride, :] if stride > 1 else x
        OH, OW = xs.shape[1], xs.shape[2]
        A = xs.reshape(N * OH * OW, C)
        r = None if residual is None else residual.reshape(N * OH * OW, -1)
        y = matmul_bn(A, layer['B'], layer['scale'], layer['bias'],
                      relu=relu, residual=r)
        return y.reshape(N, OH, OW, -1)
    if kh == 3 and kw == 3 and stride == 1 and pad == 1 and residual is None:
        return conv3x3_implicit(x, layer, relu=relu)
    # Fallback (7x7/2 stem + the three 3x3/2 convs): bf16 im2col + GEMM.
    # TODO(synk): strided convs could also be implicit GEMM; left as im2col
    # since they are a small fraction of the network's FLOPs/traffic.
    p, OH, OW = im2col(x.astype(jnp.bfloat16), kh, kw, stride, pad)
    A = p.reshape(N * OH * OW, kh * kw * C)
    assert residual is None
    y = matmul_bn(A, layer['B'], layer['scale'], layer['bias'], relu=relu)
    return y.reshape(N, OH, OW, -1)


def bottleneck(x, blk):
    out = conv_bn_act(x, blk['conv1'], relu=True)
    out = conv_bn_act(out, blk['conv2'], relu=True)
    if 'down' in blk:
        identity = conv_bn_act(x, blk['down'], relu=False)
    else:
        identity = x
    # residual add + ReLU fused into the conv3 GEMM epilogue
    return conv_bn_act(out, blk['conv3'], relu=True, residual=identity)


def feature_extraction(x_nhwc, packed):
    x = conv_bn_act(x_nhwc, packed['conv1'], relu=True)   # 7x7/2 conv+BN+ReLU
    x = maxpool_3x3_s2(x)                                 # 3x3/2 maxpool
    for blocks in packed['layers']:
        for blk in blocks:
            x = bottleneck(x, blk)
    return global_avg_pool(x)                             # (N, 2048) f32


def resnet50_jigsaw_forward(x, packed, num_tiles, num_classes):
    """x: (B, T, C, H, W) float32 (NCHW tiles), returns (B, num_classes)."""
    B, T, C, H, W = x.shape
    xt = jnp.transpose(x, (1, 0, 2, 3, 4))[:num_tiles]      # (T, B, C, H, W)
    xf = xt.reshape(num_tiles * B, C, H, W)
    xf = jnp.transpose(xf, (0, 2, 3, 1))                     # NHWC
    feats = feature_extraction(xf, packed)                   # (T*B, 2048)
    feats = feats.reshape(num_tiles, B, 2048)
    feats = jnp.transpose(feats, (1, 0, 2)).reshape(B, num_tiles * 2048)
    fc = packed['fc']
    logits = matmul_bn(feats, fc['B'], fc['scale'], fc['bias'],
                       relu=False, out_dtype=jnp.float32)
    return logits[:, :num_classes]


# ----------------------------------------------------------------------------
# Weight packing (done ONCE outside the forward pass)
# ----------------------------------------------------------------------------
def fold_bn(bn):
    scale = bn['gamma'] / jnp.sqrt(bn['var'] + BN_EPS)
    bias = bn['beta'] - bn['mean'] * scale
    return scale, bias


def _pack_conv(w, bn, stride, pad, cin_pad=None):
    cout, cin, kh, kw = w.shape
    scale, bias = fold_bn(bn)
    if cin_pad is None:
        cin_pad = _round_up(cin, 128)      # matches carried activation padding
    K = kh * kw * cin_pad
    Kp = _round_up(K, 128)
    Np = _round_up(cout, 128)
    wt = jnp.transpose(w, (2, 3, 1, 0))                      # (kh, kw, cin, cout)
    B = jnp.zeros((kh, kw, cin_pad, Np), jnp.float32).at[:, :, :cin, :cout].set(wt)
    B = B.reshape(K, Np)
    if Kp != K:
        B = jnp.pad(B, ((0, Kp - K), (0, 0)))
    B = B.astype(jnp.bfloat16)
    s_p = jnp.zeros((1, Np), jnp.float32).at[0, :cout].set(scale)
    c_p = jnp.zeros((1, Np), jnp.float32).at[0, :cout].set(bias)
    return dict(B=B, scale=s_p, bias=c_p, kh=kh, kw=kw, stride=stride, pad=pad)


def _pack_fc(fc_w, fc_b):
    N, K = fc_w.shape
    Kp, Np = _round_up(K, 128), _round_up(N, 128)
    B_p = jnp.zeros((Kp, Np), jnp.bfloat16).at[:K, :N].set(
        fc_w.T.astype(jnp.bfloat16))
    s_p = jnp.zeros((1, Np), jnp.float32).at[0, :N].set(1.0)
    c_p = jnp.zeros((1, Np), jnp.float32).at[0, :N].set(fc_b)
    return dict(B=B_p, scale=s_p, bias=c_p)


def pack_params(params):
    packed = {'conv1': _pack_conv(params['conv1_w'], params['bn1'], 2, 3,
                                  cin_pad=3),
              'layers': []}
    for blocks in params['layers']:
        pblocks = []
        for blk in blocks:
            pblk = {'conv1': _pack_conv(blk['w1'], blk['bn1'], 1, 0),
                    'conv2': _pack_conv(blk['w2'], blk['bn2'], blk['stride'], 1),
                    'conv3': _pack_conv(blk['w3'], blk['bn3'], 1, 0)}
            if 'wd' in blk:
                pblk['down'] = _pack_conv(blk['wd'], blk['bnd'], blk['stride'], 0)
            pblocks.append(pblk)
        packed['layers'].append(pblocks)
    packed['fc'] = _pack_fc(params['fc_w'], params['fc_b'])
    return packed


# ----------------------------------------------------------------------------
# Deterministic parameter init (matches __initialize_weights semantics)
# ----------------------------------------------------------------------------
def _conv_w(key, cin, cout, k):
    # kaiming_normal_(mode='fan_out', nonlinearity='relu')
    std = math.sqrt(2.0 / (cout * k * k))
    return std * jax.random.normal(key, (cout, cin, k, k), jnp.float32)


def _bn(c):
    return dict(gamma=jnp.ones((c,), jnp.float32),
                beta=jnp.zeros((c,), jnp.float32),
                mean=jnp.zeros((c,), jnp.float32),
                var=jnp.ones((c,), jnp.float32))


def init_params(key, num_tiles, num_classes):
    keys = jax.random.split(key, 64)
    ki = iter(range(64))
    params = {'conv1_w': _conv_w(keys[next(ki)], 3, 64, 7), 'bn1': _bn(64)}
    cfg = [(64, 3, 1), (128, 4, 2), (256, 6, 2), (512, 3, 2)]
    inplanes = 64
    layers = []
    for planes, n_blocks, stride in cfg:
        blocks = []
        for bi in range(n_blocks):
            s = stride if bi == 0 else 1
            blk = {
                'w1': _conv_w(keys[next(ki)], inplanes, planes, 1),
                'bn1': _bn(planes),
                'w2': _conv_w(keys[next(ki)], planes, planes, 3),
                'bn2': _bn(planes),
                'w3': _conv_w(keys[next(ki)], planes, planes * 4, 1),
                'bn3': _bn(planes * 4),
                'stride': s,
            }
            if s != 1 or inplanes != planes * 4:
                blk['wd'] = _conv_w(keys[next(ki)], inplanes, planes * 4, 1)
                blk['bnd'] = _bn(planes * 4)
            blocks.append(blk)
            inplanes = planes * 4
        layers.append(blocks)
    params['layers'] = layers
    # merge_tiles_2_pred: Linear(num_tiles * 2048, num_classes)
    params['fc_w'] = 0.01 * jax.random.normal(
        keys[next(ki)], (num_classes, num_tiles * 2048), jnp.float32)
    params['fc_b'] = jnp.zeros((num_classes,), jnp.float32)
    return params


# ----------------------------------------------------------------------------
if __name__ == "__main__":
    key = jax.random.PRNGKey(0)
    k_param, k_x = jax.random.split(key)

    num_tiles, num_classes = 9, 100      # forward hard-codes 9 tiles
    B, C, H, W = 2, 3, 32, 32            # small spatial input per tile

    params = init_params(k_param, num_tiles, num_classes)
    packed = pack_params(params)         # weights packed once, reused per call
    x = jax.random.normal(k_x, (B, num_tiles, C, H, W), jnp.float32)

    out = resnet50_jigsaw_forward(x, packed, num_tiles, num_classes)
    out = jax.block_until_ready(out)
    assert out.shape == (B, num_classes)
    assert bool(jnp.all(jnp.isfinite(out)))
    print("KERNEL_OK")
</pallas_src>

<mosaic_0001>
module attributes {stable_mosaic.version = 11 : i64} {
  func.func @_gemm_bn_kernel(%arg0: i32, %arg1: i32, %arg2: memref<512x256xbf16, #tpu.memory_space<vmem>>, %arg3: memref<256x128xbf16, #tpu.memory_space<vmem>>, %arg4: memref<1x128xf32, #tpu.memory_space<vmem>>, %arg5: memref<1x128xf32, #tpu.memory_space<vmem>>, %arg6: memref<512x128xbf16, #tpu.memory_space<vmem>>) attributes {dimension_semantics = [#tpu.dimension_semantics<parallel>, #tpu.dimension_semantics<parallel>], iteration_bounds = array<i64: 9, 1>, scalar_prefetch = 0 : i64, scratch_operands = 0 : i64, tpu.core_type = #tpu.core_type<tc>, window_params = [{transform_indices = @transform_0, window_bounds = array<i64: 512, 256>}, {transform_indices = @transform_1, window_bounds = array<i64: 256, 128>}, {transform_indices = @transform_2, window_bounds = array<i64: 1, 128>}, {transform_indices = @transform_3, window_bounds = array<i64: 1, 128>}, {transform_indices = @transform_4, window_bounds = array<i64: 512, 128>}]} {
    %c0 = arith.constant 0 : index
    %c0_0 = arith.constant 0 : index
    %0 = vector.load %arg2[%c0, %c0_0] : memref<512x256xbf16, #tpu.memory_space<vmem>>, vector<512x256xbf16>
    %c0_1 = arith.constant 0 : index
    %c0_2 = arith.constant 0 : index
    %1 = vector.load %arg3[%c0_1, %c0_2] : memref<256x128xbf16, #tpu.memory_space<vmem>>, vector<256x128xbf16>
    %cst = arith.constant dense<0.000000e+00> : vector<512x128xf32>
    %2 = tpu.matmul %0, %1, %cst {dimension_numbers = #tpu.dot_dimension_numbers<[1], [0], [0], [1], [0, 0, 1, 1], [], []>} : vector<512x256xbf16>, vector<256x128xbf16>, vector<512x128xf32> -> vector<512x128xf32>
    %c0_3 = arith.constant 0 : index
    %c0_4 = arith.constant 0 : index
    %3 = vector.load %arg4[%c0_3, %c0_4] : memref<1x128xf32, #tpu.memory_space<vmem>>, vector<1x128xf32>
    %4 = vector.broadcast %3 : vector<1x128xf32> to vector<512x128xf32>
    %5 = arith.mulf %2, %4 : vector<512x128xf32>
    %c0_5 = arith.constant 0 : index
    %c0_6 = arith.constant 0 : index
    %6 = vector.load %arg5[%c0_5, %c0_6] : memref<1x128xf32, #tpu.memory_space<vmem>>, vector<1x128xf32>
    %7 = vector.broadcast %6 : vector<1x128xf32> to vector<512x128xf32>
    %8 = arith.addf %5, %7 : vector<512x128xf32>
    %cst_7 = arith.constant 0.000000e+00 : f32
    %9 = vector.broadcast %cst_7 : f32 to vector<512x128xf32>
    %10 = arith.maximumf %8, %9 : vector<512x128xf32>
    %11 = arith.truncf %10 : vector<512x128xf32> to vector<512x128xbf16>
    %c0_8 = arith.constant 0 : index
    %c0_9 = arith.constant 0 : index
    %12 = vector.load %arg6[%c0_8, %c0_9] : memref<512x128xbf16, #tpu.memory_space<vmem>>, vector<512x128xbf16>
    tpu.vector_store %arg6[%c0_8, %c0_9], %11 {strides = array<i32>} : memref<512x128xbf16, #tpu.memory_space<vmem>>, vector<512x128xbf16>,
    return
  }
  func.func @transform_0(%arg0: i32, %arg1: i32) -> (i32, i32) {
    %c0_i32 = arith.constant 0 : i32
    %c0_i32_0 = arith.constant 0 : i32
    return %arg0, %c0_i32 : i32, i32
  }
  func.func @transform_1(%arg0: i32, %arg1: i32) -> (i32, i32) {
    %c0_i32 = arith.constant 0 : i32
    %c0_i32_0 = arith.constant 0 : i32
    return %c0_i32, %arg1 : i32, i32
  }
  func.func @transform_2(%arg0: i32, %arg1: i32) -> (i32, i32) {
    %c0_i32 = arith.constant 0 : i32
    %c0_i32_0 = arith.constant 0 : i32
    return %c0_i32, %arg1 : i32, i32
  }
  func.func @transform_3(%arg0: i32, %arg1: i32) -> (i32, i32) {
    %c0_i32 = arith.constant 0 : i32
    %c0_i32_0 = arith.constant 0 : i32
    return %c0_i32, %arg1 : i32, i32
  }
  func.func @transform_4(%arg0: i32, %arg1: i32) -> (i32, i32) {
    %c0_i32 = arith.constant 0 : i32
    return %arg0, %arg1 : i32, i32
  }
}

</mosaic_0001>

<bundles_post_ra>
// kernel: tpu_custom_call.1
= control target key start
LH: loop header
LB: loop body
LE: loop exit
PB: predicated region body
PF: predicated region fallthrough
CT: control target
= control target key end

     0   :  { %9 = vsyncpa [#allocation3], 0  ;;  %s3213_s0 = inlined_call_operand.hbm [shape: bf16[4608,256], index: 0, kind: input, shape index: {}]   ;;  %s3214_s1 = inlined_call_operand.hbm [shape: bf16[256,128], index: 1, kind: input, shape index: {}]   ;;  %s3215_s2 = inlined_call_operand.hbm [shape: f32[1,128], index: 2, kind: input, shape index: {}]   ;;  %s3216_s3 = inlined_call_operand.hbm [shape: f32[1,128], index: 3, kind: input, shape index: {}]   ;;  %s3217_s4 = inlined_call_operand.hbm [shape: bf16[4608,128], index: 4, kind: output, shape index: {}]  }
   0x1   :  { %11 = vsyncpa [#allocation3 + $0x1], 0 }
   0x2   :  { %12 = vsyncpa [#allocation6], 0 }
   0x3   :  { %13 = vsyncpa [#allocation9], 0 }
   0x4   :  { %14 = vsyncpa [#allocation4], 0 }
   0x5   :  { %16 = vsyncpa [#allocation4 + $0x1], 0  ;;  %s2668_s15 = smov 0   ;;  %s2670_s16 = smov 0  }
   0x6   :  { %s2672_s17 = smov 0   ;;  %s2674_s18 = smov 0  }
   0x7   :  { %s2676_s19 = smov 0   ;;  %s2678_s20 = smov 0  }
   0x8 LB: > { %s1755_s21 = sadd.s32 4294967295, %s2629_s20   ;;  %s1756_s22 = sadd.s32 4294967294, %s2629_s20   ;;  %s2629_s20 = sphi %s2678_s20, %s22_s20   ;;  %s2625_s19 = sphi %s2676_s19, %s3243_s19   ;;  %s2621_s18 = sphi %s2674_s18, %s3242_s18   ;;  %s2617_s17 = sphi %s2672_s17, %s3241_s17   ;;  %s2613_s16 = sphi %s2670_s16, %s3240_s16   ;;  %s2609_s15 = sphi %s2668_s15, %s3239_s15  }
   0x9   : > { %p54_p0 = scmp.ne.s32.totalorder %s2613_s16, %s2609_s15  ;;  %p2702_p1 = scmp.eq.s32.totalorder %s1755_s21, 0 }
   0xa   : > { %p2706_p2 = scmp.eq.s32.totalorder %s1755_s21, 8  ;;  %p164_p3 = scmp.eq.s32.totalorder %s1756_s22, 8 }
   0xb   : > { %s3223_s23 = scalar_select %p2702_p1, 1, 0 }
   0xc   : > { %s3224_s24 = scalar_select %p2706_p2, 1, 0 }
   0xd   : > { %p2712_p4 = por %p2702_p1, %p54_p0  ;;  %p1757_p5 = scmp.ge.s32.totalorder %s2629_s20, 1 }
   0xe   : > { %p2717_p6 = por %p164_p3, %p54_p0  ;;  %p171_p7 = scmp.lt.s32.totalorder %s2629_s20, 10 }
   0xf   : > { %s3225_s25 = scalar_select %p2712_p4, 1, 0 }
  0x10   : > { %s3226_s26 = scalar_select %p2717_p6, 1, 0 }
  0x11   : > { %p2722_p8 = pnand %p1757_p5, %p171_p7  ;;  %s2631_s28 = smov [#allocation5]  }
  0x12   : > { %3227 = sst [smem:[#allocation15_spill]] %s3226_s26  ;;  %s185_s29 = sshll.u32 %s2631_s28, 4  ;;  %s2726_s29 = int_to_ptr.vmem [resolvable:$true] %s185_s29 }
  0x13   : > { %s3228_s27 = scalar_select %p2722_p8, 1, 0 }
  0x14   : > { %p2229_p9 = pneg %p2722_p8  ;;  %s2632_s5 = smov [#allocation7]  }
  0x15   : > { %s201_s6 = sshll.u32 %s2632_s5, 4  ;;  %s2633_s7 = smov [#allocation8]   ;;  %s2736_s6 = int_to_ptr.vmem [resolvable:$true] %s201_s6 }
  0x16   : > { %p2732_p10 = pnand %p2229_p9, %p2702_p1  ;;  %s2738_s8 = sshll.u32 %s2633_s7, 4  ;;  %s215_s8 = int_to_ptr.vmem [resolvable:$true] %s2738_s8 }
  0x17   : > { %s2425_s11 = scalar_lea.hbm %s3214_s1, 2048 }
  0x18   : > { %p2426_p11 = scmp.ne.s32.totalorder %s3214_s1, %s2425_s11  ;;  %p2748_p12 = pneg %p2732_p10 }
  0x19   : > { %p2432_p3 = scmp.lt.u32.totalorder %s2425_s11, %s3214_s1 }
  0x1a   : > { %p2428_p13 = pnand %p2748_p12, %p2426_p11 }
  0x1c   : > { %p2429_p0 = pneg %p2428_p13 }
  0x1e   : > { %p2434_p5 = pnand %p2432_p3, %p2429_p0 }
  0x20   : > { %2437 = shalt.err (!%p2434_p5)
}
  0x21   : > { %s2438_s28 = scalar_lea.vmem %s2726_s29, 2048  ;;  %p2446_p1 = scmp.lt.s32.totalorder %s2726_s29, %s2726_s29 }
  0x22   : > { %p2439_p7 = scmp.ne.s32.totalorder %s2726_s29, %s2438_s28  ;;  %p2447_p4 = scmp.lt.s32.totalorder %s2438_s28, %s2438_s28 }
  0x24   : > { %p2441_p9 = pnand %p2439_p7, %p2748_p12  ;;  %p2448_p11 = por %p2447_p4, %p2446_p1 }
  0x26   : > { %p2442_p6 = pneg %p2441_p9 }
  0x28   : > { %p2449_p13 = pnand %p2448_p11, %p2442_p6 }
  0x2a   : > { %2452 = shalt.err (!%p2449_p13)
}
  0x2b   : > { %s2634_s5 = smov 64   ;;  %s2635_s7 = smov 4  }
  0x2c   : > { %2232 = dma.hbm_to_vmem [thread:$0]  (!%p2732_p10), %s3214_s1, 2048, %s2726_s29, [#allocation6], %s2634_s5, %s2634_s5, %s2635_s7  }
  0x2d   : > { %s2453_s13 = scalar_lea.hbm %s3215_s2, 16 }
  0x2e   : > { %p2454_p1 = scmp.ne.s32.totalorder %s3215_s2, %s2453_s13  ;;  %p2460_p0 = scmp.lt.u32.totalorder %s2453_s13, %s3215_s2 }
  0x30   : > { %p2456_p4 = pnand %p2454_p1, %p2748_p12 }
  0x32   : > { %p2457_p6 = pneg %p2456_p4 }
  0x34   : > { %p2462_p3 = pnand %p2460_p0, %p2457_p6 }
  0x36   : > { %2465 = shalt.err (!%p2462_p3)
}
  0x37   : > { %s2466_s29 = scalar_lea.vmem %s2736_s6, 16  ;;  %s2473_s5 = scalar_lea.vmem %s2736_s6, 32 }
  0x38   : > { %p2467_p5 = scmp.ne.s32.totalorder %s2736_s6, %s2466_s29  ;;  %p2474_p11 = scmp.lt.s32.totalorder %s2736_s6, %s2736_s6 }
  0x39   : > { %p2475_p13 = scmp.lt.s32.totalorder %s2473_s5, %s2466_s29 }
  0x3a   : > { %p2469_p7 = pnand %p2467_p5, %p2748_p12 }
  0x3b   : > { %p2476_p1 = por %p2475_p13, %p2474_p11 }
  0x3c   : > { %p2470_p9 = pneg %p2469_p7 }
  0x3e   : > { %p2477_p4 = pnand %p2476_p1, %p2470_p9 }
  0x40   : > { %2480 = shalt.err (!%p2477_p4)
}
  0x41   : > { %2235 = dma.hbm_to_vmem [thread:$0]  (!%p2732_p10), %s3215_s2, 16, %s2736_s6, [#allocation6]  }
  0x42   : > { %s2481_s11 = scalar_lea.hbm %s3216_s3, 16 }
  0x43   : > { %p2482_p6 = scmp.ne.s32.totalorder %s3216_s3, %s2481_s11  ;;  %p2488_p5 = scmp.lt.u32.totalorder %s2481_s11, %s3216_s3 }
  0x45   : > { %p2484_p0 = pnand %p2482_p6, %p2748_p12 }
  0x47   : > { %p2485_p3 = pneg %p2484_p0 }
  0x49   : > { %p2490_p7 = pnand %p2488_p5, %p2485_p3 }
  0x4b   : > { %2493 = shalt.err (!%p2490_p7)
}
  0x4c   : > { %s2494_s28 = scalar_lea.vmem %s215_s8, 16  ;;  %s2501_s6 = scalar_lea.vmem %s215_s8, 32 }
  0x4d   : > { %p2495_p9 = scmp.ne.s32.totalorder %s215_s8, %s2494_s28  ;;  %p2502_p1 = scmp.lt.s32.totalorder %s215_s8, %s215_s8 }
  0x4e   : > { %p2503_p4 = scmp.lt.s32.totalorder %s2501_s6, %s2494_s28 }
  0x4f   : > { %p2497_p11 = pnand %p2495_p9, %p2748_p12 }
  0x50   : > { %p2504_p8 = por %p2503_p4, %p2502_p1 }
  0x51   : > { %p2498_p13 = pneg %p2497_p11 }
  0x53   : > { %p2505_p2 = pnand %p2504_p8, %p2498_p13 }
  0x55   : > { %2508 = shalt.err (!%p2505_p2)
}
  0x56   : > { %2238 = dma.hbm_to_vmem [thread:$0]  (!%p2732_p10), %s3216_s3, 16, %s215_s8, [#allocation9]  }
  0x57   : > { %s41_s14 = sadd.s32 1, %s2617_s17  ;;  %s34_s26 = sadd.s32 1, %s2625_s19 }
  0x58   : > { %p48_p2 = scmp.ne.s32.totalorder %s2617_s17, %s2613_s16  ;;  %p36_p8 = scmp.ge.s32.totalorder %s34_s26, 9 }
  0x59   : > { %p49_p12 = scmp.eq.s32.totalorder %s2629_s20, 0  ;;  %p3231_p6 = scmp.ne.s32.totalorder %s3224_s24, 0 }
  0x5a   : > { %p2250_p3 = scmp.lt.s32.totalorder %s2629_s20, 9  ;;  %s3245_s26 = smov (%p36_p8, %s34_s26), 0 }
  0x5b   : > { %p2819_p0 = por %p3231_p6, %p48_p2  ;;  %p50_p5 = por %p49_p12, %p48_p2 }
  0x5c   : > { %s225_s7 = sand.u32 1, %s2617_s17   ;;  %s38_s9 = ssub.s32 %s2625_s19, %s3245_s26 }
  0x5d   : > { %p39_p7 = scmp.eq.s32.totalorder %s38_s9, 0  ;;  %s1762_s8 = sshll.u32 %s225_s7, 9 }
  0x5e   : > { %s1924_s10 = sshll.u32 %s2625_s19, 13  ;;  %s229_s21 = scalar_lea.vmem [#allocation2], %s1762_s8 }
  0x5f   : > { %s2831_s11 = scalar_select %p39_p7, %s2617_s17, %s41_s14  }
  0x60   : > { %s2836_s24 = scalar_lea.hbm %s3213_s0, %s1924_s10  ;;  %s237_s22 = sshll.u32 %s229_s21, 4  ;;  %s2838_s22 = int_to_ptr.vmem [resolvable:$true] %s237_s22 }
  0x61   : > { %p2842_p10 = pnand %p2250_p3, %p50_p5  ;;  %s2846_s6 = scalar_lea.sflag [#allocation3], %s225_s7 }
  0x62   : > { %s2509_s29 = scalar_lea.hbm %s2836_s24, 8192  ;;  %s2514_s9 = scalar_lea.hbm %s3213_s0, 73728 }
  0x63   : > { %p2510_p9 = scmp.ne.s32.totalorder %s2836_s24, %s2509_s29  ;;  %p2511_p11 = pneg %p2842_p10 }
  0x64   : > { %p2515_p4 = scmp.lt.u32.totalorder %s2836_s24, %s3213_s0  ;;  %p2516_p2 = scmp.lt.u32.totalorder %s2514_s9, %s2509_s29 }
  0x65   : > { %p2512_p13 = pnand %p2511_p11, %p2510_p9  ;;  %p2518_p12 = scmp.lt.u32.totalorder %s2509_s29, %s2836_s24 }
  0x66   : > { %p2517_p8 = por %p2516_p2, %p2515_p4 }
  0x67   : > { %p2513_p1 = pneg %p2512_p13 }
  0x68   : > { %p2519_p6 = por %p2518_p12, %p2517_p8 }
  0x6a   : > { %p2520_p3 = pnand %p2519_p6, %p2513_p1 }
  0x6c   : > { %2523 = shalt.err (!%p2520_p3)
}
  0x6d   : > { %s2524_s7 = scalar_lea.vmem %s2838_s22, 8192  ;;  %s2636_s12 = smov [#allocation2]  }
  0x6e   : > { %p2525_p5 = scmp.ne.s32.totalorder %s2838_s22, %s2524_s7  ;;  %s2529_s13 = sshll.u32 %s2636_s12, 4  ;;  %s2530_s13 = int_to_ptr.vmem [resolvable:$false] %s2529_s13 }
  0x6f   : > { %s2531_s21 = scalar_lea.vmem %s2530_s13, 16384  ;;  %p2532_p13 = scmp.lt.s32.totalorder %s2838_s22, %s2530_s13 }
  0x70   : > { %p2527_p7 = pnand %p2525_p5, %p2511_p11  ;;  %p2533_p4 = scmp.lt.s32.totalorder %s2531_s21, %s2524_s7 }
  0x72   : > { %p2528_p9 = pneg %p2527_p7  ;;  %p2534_p2 = por %p2533_p4, %p2532_p13 }
  0x74   : > { %p2535_p8 = pnand %p2534_p2, %p2528_p9 }
  0x76   : > { %2538 = shalt.err (!%p2535_p8)
}
  0x77   : > { %s2637_s29 = smov 128   ;;  %s2638_s5 = smov 8  }
  0x78   : > { %2242 = dma.hbm_to_vmem [thread:$0]  (!%p2842_p10), %s2836_s24, 8192, %s2838_s22, %s2846_s6, %s2637_s29, %s2637_s29, %s2638_s5  }
  0x79   : > { %p3234_p11 = scmp.ne.s32.totalorder %s3228_s27, 0 }
  0x7a   : > { %s2877_s14 = sand.u32 (!%p3234_p11), 1, %s2613_s16   ;;  %p3235_p1 = scmp.ne.s32.totalorder (!%p3234_p11), %s3225_s25, 0 }
  0x7b   : > { %249 = sbr.rel (%p3234_p11) target bundleno = 559 (0x22f), region = 36  ;;  %s1767_s9 = sshll.u32 (!%p3234_p11), %s2877_s14, 9 }
  0x7c   : > { %s252_s8 = scalar_lea.sflag (!%p3234_p11), [#allocation3], %s2877_s14  ;;  %s2881_s10 = scalar_lea.vmem (!%p3234_p11), [#allocation2], %s1767_s9 }
  0x82   : > { %2592 = dma.done.wait (%p3235_p1), %s252_s8, 8192  }
  0x83   : > { %2594 = vsyncadd (%p3235_p1), %s252_s8, 4294959104  ;;  %p3236_p10 = scmp.ne.s32.totalorder %s3223_s23, 0 }
  0x85   : > { %2596 = dma.done.wait (%p3236_p10), [#allocation6], 2064  }
  0x86   : > { %2598 = vsyncadd (%p3236_p10), [#allocation6], 4294965232 }
  0x87   : > { %2600 = dma.done.wait (%p3236_p10), [#allocation9], 16  }
  0x88   : > { %2602 = vsyncadd (%p3236_p10), [#allocation9], 4294967280  ;;  %v2639_v0 = vmov 0   ;;  %v2313_v1 = vld [vmem:[#allocation5] sm:$0xff]   ;;  %v2314_v2 = vld [vmem:[#allocation5 + $0x8] sm:$0xff]   ;;  %s1771_s23 = sshll.u32 %s2877_s14, 8 }
  0x89   : > { %807 = vmatprep.subr.bf16.mxu0 %v2639_v0  ;;  %2181 = vmatprep.subr.bf16.mxu1 %v2639_v0  ;;  %v2315_v3 = vld [vmem:[#allocation5 + $0x10] sm:$0xff]   ;;  %v2316_v4 = vld [vmem:[#allocation5 + $0x18] sm:$0xff]   ;;  %v2317_v5 = vld [vmem:[#allocation5 + $0x20] sm:$0xff]   ;;  %s3006_s25 = scalar_lea.vmem [#allocation10], %s1771_s23  ;;  %s1989_s27 = sshll.u32 %s2621_s18, 12 }
  0x8a   : > { %808 = vmatpush1.bf16.msra.mxu0 %v2313_v1  ;;  %2197 = vmatpush1.bf16.msra.mxu1 %v2313_v1  ;;  %v2331_v6 = vld [vmem:[%s2881_s10 + $0x4] ss:$8 sps:$4 sm:$0xff]   ;;  %v2319_v9 = vld [vmem:[#allocation5 + $0x30] sm:$0xff]   ;;  %v2320_v10 = vld [vmem:[#allocation5 + $0x38] sm:$0xff]   ;;  %s1637_s24 = sshll.u32 %s3006_s25, 4  ;;  %s3161_s6 = scalar_lea.hbm %s3217_s4, %s1989_s27  ;;  %s3163_s24 = int_to_ptr.vmem [resolvable:$true] %s1637_s24 }
  0x8b   : > { %809 = vmatprep.subr.bf16.mxu0 %v2639_v0  ;;  %2182 = vmatprep.subr.bf16.mxu1 %v2639_v0  ;;  %v2318_v7 = vld [vmem:[#allocation5 + $0x28] sm:$0xff]   ;;  %v2321_v11 = vld [vmem:[#allocation5 + $0x40] sm:$0xff]   ;;  %v2323_v13 = vld [vmem:[#allocation5 + $0x50] sm:$0xff]   ;;  %s1623_s18 = scalar_lea.sflag [#allocation4], %s2877_s14  ;;  %s2539_s7 = scalar_lea.vmem %s3163_s24, 4096 }
  0x8c   : > { %v2334_v8 = vld [vmem:[%s2881_s10 + $0x104] ss:$8 sps:$4 sm:$0xff]   ;;  %839 = vmatprep.mubr.bf16.mxu0 %v2331_v6  ;;  %v2324_v14 = vld [vmem:[#allocation5 + $0x58] sm:$0xff]   ;;  %v2327_v17 = vld [vmem:[#allocation5 + $0x70] sm:$0xff]   ;;  %p2540_p12 = scmp.ne.s32.totalorder %s3163_s24, %s2539_s7  ;;  %s2640_s12 = smov [#allocation10]  }
  0x8d   : > { %967 = vmatprep.mubr.bf16.mxu1 %v2334_v8  ;;  %v2322_v12 = vld [vmem:[#allocation5 + $0x48] sm:$0xff]   ;;  %v2325_v15 = vld [vmem:[#allocation5 + $0x60] sm:$0xff]   ;;  %v2328_v18 = vld [vmem:[#allocation5 + $0x78] sm:$0xff]   ;;  %s2543_s13 = sshll.u32 %s2640_s12, 4  ;;  %s2544_s13 = int_to_ptr.vmem [resolvable:$false] %s2543_s13 }
  0x8e   : > { %810 = vmatpush1.bf16.msra.mxu0 %v2314_v2  ;;  %2198 = vmatpush1.bf16.msra.mxu1 %v2314_v2  ;;  %v2326_v16 = vld [vmem:[#allocation5 + $0x68] sm:$0xff]   ;;  %v2335_v21 = vld [vmem:[%s2881_s10 + $0x14] ss:$8 sps:$4 sm:$0xff]   ;;  %v2339_v23 = vld [vmem:[%s2881_s10 + $0x10] ss:$8 sps:$4 sm:$0xff]   ;;  %p2541_p6 = pnand %p2540_p12, %p2819_p0  ;;  %s2545_s21 = scalar_lea.vmem %s2544_s13, 8192 }
  0x8f   : > { %811 = vmatprep.subr.bf16.mxu0 %v2639_v0  ;;  %2183 = vmatprep.subr.bf16.mxu1 %v2639_v0  ;;  %v2329_v19 = vld [vmem:[%s2881_s10] ss:$8 sps:$4 sm:$0xff]   ;;  %v2337_v22 = vld [vmem:[%s2881_s10 + $0x114] ss:$8 sps:$4 sm:$0xff]   ;;  %v2340_v24 = vld [vmem:[%s2881_s10 + $0x110] ss:$8 sps:$4 sm:$0xff]   ;;  %p2546_p5 = scmp.lt.s32.totalorder %s3163_s24, %s2544_s13  ;;  %p2547_p7 = scmp.lt.s32.totalorder %s2545_s21, %s2539_s7 }
  0x90   : > { %v2332_v20 = vld [vmem:[%s2881_s10 + $0x100] ss:$8 sps:$4 sm:$0xff]   ;;  %v2341_v25 = vld [vmem:[%s2881_s10 + $0x24] ss:$8 sps:$4 sm:$0xff]   ;;  %v2347_v29 = vld [vmem:[%s2881_s10 + $0x34] ss:$8 sps:$4 sm:$0xff]   ;;  %p2542_p3 = pneg %p2541_p6 }
  0x91   : > { %v2343_v26 = vld [vmem:[%s2881_s10 + $0x124] ss:$8 sps:$4 sm:$0xff]   ;;  %v2345_v27 = vld [vmem:[%s2881_s10 + $0x20] ss:$8 sps:$4 sm:$0xff]   ;;  %v2349_v30 = vld [vmem:[%s2881_s10 + $0x134] ss:$8 sps:$4 sm:$0xff]   ;;  %p2548_p9 = por %p2547_p7, %p2546_p5 }
  0x92   : > { %812 = vmatpush1.bf16.msra.mxu0 %v2315_v3  ;;  %2199 = vmatpush1.bf16.msra.mxu1 %v2315_v3  ;;  %v2346_v28 = vld [vmem:[%s2881_s10 + $0x120] ss:$8 sps:$4 sm:$0xff]   ;;  %v2351_v31 = vld [vmem:[%s2881_s10 + $0x30] ss:$8 sps:$4 sm:$0xff]   ;;  %v2353_v33 = vld [vmem:[%s2881_s10 + $0x44] ss:$8 sps:$4 sm:$0xff]  }
  0x93   : > { %813 = vmatprep.subr.bf16.mxu0 %v2639_v0  ;;  %2184 = vmatprep.subr.bf16.mxu1 %v2639_v0  ;;  %v2352_v32 = vld [vmem:[%s2881_s10 + $0x130] ss:$8 sps:$4 sm:$0xff]   ;;  %v2355_v34 = vld [vmem:[%s2881_s10 + $0x144] ss:$8 sps:$4 sm:$0xff]   ;;  %v2357_v35 = vld [vmem:[%s2881_s10 + $0x40] ss:$8 sps:$4 sm:$0xff]   ;;  %p2549_p13 = pnand %p2548_p9, %p2542_p3 }
  0x94   : > { %v2358_v36 = vld [vmem:[%s2881_s10 + $0x140] ss:$8 sps:$4 sm:$0xff]   ;;  %v2359_v37 = vld [vmem:[%s2881_s10 + $0x54] ss:$8 sps:$4 sm:$0xff]   ;;  %v2363_v39 = vld [vmem:[%s2881_s10 + $0x50] ss:$8 sps:$4 sm:$0xff]  }
  0x95   : > { %v2361_v38 = vld [vmem:[%s2881_s10 + $0x154] ss:$8 sps:$4 sm:$0xff]   ;;  %v2364_v40 = vld [vmem:[%s2881_s10 + $0x150] ss:$8 sps:$4 sm:$0xff]   ;;  %v2365_v41 = vld [vmem:[%s2881_s10 + $0x64] ss:$8 sps:$4 sm:$0xff]  }
  0x96   : > { %814 = vmatpush1.bf16.msra.mxu0 %v2316_v4  ;;  %2200 = vmatpush1.bf16.msra.mxu1 %v2316_v4  ;;  %v2367_v42 = vld [vmem:[%s2881_s10 + $0x164] ss:$8 sps:$4 sm:$0xff]   ;;  %v2369_v43 = vld [vmem:[%s2881_s10 + $0x60] ss:$8 sps:$4 sm:$0xff]   ;;  %v2371_v45 = vld [vmem:[%s2881_s10 + $0x74] ss:$8 sps:$4 sm:$0xff]  }
  0x97   : > { %815 = vmatprep.subr.bf16.mxu0 %v2639_v0  ;;  %2185 = vmatprep.subr.bf16.mxu1 %v2639_v0  ;;  %v2370_v44 = vld [vmem:[%s2881_s10 + $0x160] ss:$8 sps:$4 sm:$0xff]   ;;  %v2373_v46 = vld [vmem:[%s2881_s10 + $0x174] ss:$8 sps:$4 sm:$0xff]   ;;  %v2375_v47 = vld [vmem:[%s2881_s10 + $0x70] ss:$8 sps:$4 sm:$0xff]  }
  0x98   : > { %v2376_v48 = vld [vmem:[%s2881_s10 + $0x170] ss:$8 sps:$4 sm:$0xff]   ;;  %v2377_v49 = vld [vmem:[%s2881_s10 + $0x84] ss:$8 sps:$4 sm:$0xff]   ;;  %v2381_v51 = vld [vmem:[%s2881_s10 + $0x80] ss:$8 sps:$4 sm:$0xff]  }
  0x99   : > { %v2379_v50 = vld [vmem:[%s2881_s10 + $0x184] ss:$8 sps:$4 sm:$0xff]   ;;  %v2382_v52 = vld [vmem:[%s2881_s10 + $0x180] ss:$8 sps:$4 sm:$0xff]   ;;  %v2383_v53 = vld [vmem:[%s2881_s10 + $0x94] ss:$8 sps:$4 sm:$0xff]  }
  0x9a   : > { %816 = vmatpush1.bf16.msra.mxu0 %v2317_v5  ;;  %2201 = vmatpush1.bf16.msra.mxu1 %v2317_v5  ;;  %v2385_v54 = vld [vmem:[%s2881_s10 + $0x194] ss:$8 sps:$4 sm:$0xff]   ;;  %v2387_v55 = vld [vmem:[%s2881_s10 + $0x90] ss:$8 sps:$4 sm:$0xff]   ;;  %v2389_v57 = vld [vmem:[%s2881_s10 + $0xa4] ss:$8 sps:$4 sm:$0xff]  }
  0x9b   : > { %817 = vmatprep.subr.bf16.mxu0 %v2639_v0  ;;  %2186 = vmatprep.subr.bf16.mxu1 %v2639_v0  ;;  %v2388_v56 = vld [vmem:[%s2881_s10 + $0x190] ss:$8 sps:$4 sm:$0xff]   ;;  %v2391_v58 = vld [vmem:[%s2881_s10 + $0x1a4] ss:$8 sps:$4 sm:$0xff]   ;;  %v2393_v59 = vld [vmem:[%s2881_s10 + $0xa0] ss:$8 sps:$4 sm:$0xff]  }
  0x9c   : > { %v2394_v60 = vld [vmem:[%s2881_s10 + $0x1a0] ss:$8 sps:$4 sm:$0xff]   ;;  %v2395_v61 = vld [vmem:[%s2881_s10 + $0xb4] ss:$8 sps:$4 sm:$0xff]   ;;  %v2399_v63 = vld [vmem:[%s2881_s10 + $0xb0] ss:$8 sps:$4 sm:$0xff]  }
  0x9d   : > { %v2397_v62 = vld [vmem:[%s2881_s10 + $0x1b4] ss:$8 sps:$4 sm:$0xff]   ;;  %v2401_v1 = vld [vmem:[%s2881_s10 + $0xc4] ss:$8 sps:$4 sm:$0xff]   ;;  %v2405_v3 = vld [vmem:[%s2881_s10 + $0xc0] ss:$8 sps:$4 sm:$0xff]  }
  0x9e   : > { %818 = vmatpush1.bf16.msra.mxu0 %v2318_v7  ;;  %2202 = vmatpush1.bf16.msra.mxu1 %v2318_v7  ;;  %v2403_v2 = vld [vmem:[%s2881_s10 + $0x1c4] ss:$8 sps:$4 sm:$0xff]   ;;  %v2406_v4 = vld [vmem:[%s2881_s10 + $0x1c0] ss:$8 sps:$4 sm:$0xff]   ;;  %v2407_v5 = vld [vmem:[%s2881_s10 + $0xd4] ss:$8 sps:$4 sm:$0xff]  }
  0x9f   : > { %819 = vmatprep.subr.bf16.mxu0 %v2639_v0  ;;  %2187 = vmatprep.subr.bf16.mxu1 %v2639_v0  ;;  %v2409_v6 = vld [vmem:[%s2881_s10 + $0x1d4] ss:$8 sps:$4 sm:$0xff]   ;;  %v2411_v7 = vld [vmem:[%s2881_s10 + $0xd0] ss:$8 sps:$4 sm:$0xff]  }
  0xa0   : > { %v2412_v8 = vld [vmem:[%s2881_s10 + $0x1d0] ss:$8 sps:$4 sm:$0xff]  }
  0xa2   : > { %820 = vmatpush1.bf16.msra.mxu0 %v2319_v9  ;;  %2203 = vmatpush1.bf16.msra.mxu1 %v2319_v9  ;;  %v2413_v9 = vld [vmem:[%s2881_s10 + $0xe4] ss:$8 sps:$4 sm:$0xff]  }
  0xa3   : > { %821 = vmatprep.subr.bf16.mxu0 %v2639_v0  ;;  %2188 = vmatprep.subr.bf16.mxu1 %v2639_v0 }
  0xa6   : > { %822 = vmatpush1.bf16.msra.mxu0 %v2320_v10  ;;  %2204 = vmatpush1.bf16.msra.mxu1 %v2320_v10  ;;  %v2415_v10 = vld [vmem:[%s2881_s10 + $0x1e4] ss:$8 sps:$4 sm:$0xff]  }
  0xa7   : > { %823 = vmatprep.subr.bf16.mxu0 %v2639_v0  ;;  %2189 = vmatprep.subr.bf16.mxu1 %v2639_v0 }
  0xaa   : > { %824 = vmatpush1.bf16.msra.mxu0 %v2321_v11  ;;  %2205 = vmatpush1.bf16.msra.mxu1 %v2321_v11  ;;  %v2417_v11 = vld [vmem:[%s2881_s10 + $0xe0] ss:$8 sps:$4 sm:$0xff]  }
  0xab   : > { %825 = vmatprep.subr.bf16.mxu0 %v2639_v0  ;;  %2190 = vmatprep.subr.bf16.mxu1 %v2639_v0 }
  0xae   : > { %826 = vmatpush1.bf16.msra.mxu0 %v2322_v12  ;;  %2206 = vmatpush1.bf16.msra.mxu1 %v2322_v12  ;;  %v2418_v12 = vld [vmem:[%s2881_s10 + $0x1e0] ss:$8 sps:$4 sm:$0xff]  }
  0xaf   : > { %827 = vmatprep.subr.bf16.mxu0 %v2639_v0  ;;  %2191 = vmatprep.subr.bf16.mxu1 %v2639_v0 }
  0xb2   : > { %828 = vmatpush1.bf16.msra.mxu0 %v2323_v13  ;;  %2207 = vmatpush1.bf16.msra.mxu1 %v2323_v13  ;;  %v2419_v13 = vld [vmem:[%s2881_s10 + $0xf4] ss:$8 sps:$4 sm:$0xff]  }
  0xb3   : > { %829 = vmatprep.subr.bf16.mxu0 %v2639_v0  ;;  %2192 = vmatprep.subr.bf16.mxu1 %v2639_v0 }
  0xb6   : > { %830 = vmatpush1.bf16.msra.mxu0 %v2324_v14  ;;  %2208 = vmatpush1.bf16.msra.mxu1 %v2324_v14  ;;  %v2421_v14 = vld [vmem:[%s2881_s10 + $0x1f4] ss:$8 sps:$4 sm:$0xff]  }
  0xb7   : > { %831 = vmatprep.subr.bf16.mxu0 %v2639_v0  ;;  %2193 = vmatprep.subr.bf16.mxu1 %v2639_v0 }
  0xba   : > { %832 = vmatpush1.bf16.msra.mxu0 %v2325_v15  ;;  %2209 = vmatpush1.bf16.msra.mxu1 %v2325_v15  ;;  %v2423_v15 = vld [vmem:[%s2881_s10 + $0xf0] ss:$8 sps:$4 sm:$0xff]  }
  0xbb   : > { %833 = vmatprep.subr.bf16.mxu0 %v2639_v0  ;;  %2194 = vmatprep.subr.bf16.mxu1 %v2639_v0 }
  0xbe   : > { %834 = vmatpush1.bf16.msra.mxu0 %v2326_v16  ;;  %2210 = vmatpush1.bf16.msra.mxu1 %v2326_v16  ;;  %v2424_v16 = vld [vmem:[%s2881_s10 + $0x1f0] ss:$8 sps:$4 sm:$0xff]  }
  0xbf   : > { %835 = vmatprep.subr.bf16.mxu0 %v2639_v0  ;;  %2195 = vmatprep.subr.bf16.mxu1 %v2639_v0 }
  0xc2   : > { %836 = vmatpush1.bf16.msra.mxu0 %v2327_v17  ;;  %2211 = vmatpush1.bf16.msra.mxu1 %v2327_v17  ;;  %v2991_v17 = vld [vmem:[#allocation7] ss:$0 sm:$0xff] }
  0xc3   : > { %837 = vmatprep.subr.bf16.mxu0 %v2639_v0  ;;  %2196 = vmatprep.subr.bf16.mxu1 %v2639_v0  ;;  %v2400_v0 = vld [vmem:[%s2881_s10 + $0x1b0] ss:$8 sps:$4 sm:$0xff]  }
  0xc6   : > { %838 = vmatpush1.bf16.msra.mxu0 %v2328_v18  ;;  %2212 = vmatpush1.bf16.msra.mxu1 %v2328_v18 }
  0xc9   : > { %840 = vmatmul.mubr.bf16.vlgmr.msra.gmra.mrb[0].mxu0 %v2329_v19  ;;  %968 = vmatmul.mubr.bf16.vlgmr.msra.gmra.mrb[0].mxu1 %v2332_v20  ;;  %v2993_v19 = vld [vmem:[#allocation8] ss:$0 sm:$0xff] }
  0xca   : > { %847 = vmatprep.mubr.bf16.mxu0 %v2335_v21  ;;  %975 = vmatprep.mubr.bf16.mxu1 %v2337_v22 }
  0xd1   : > { %848 = vmatmul.mubr.bf16.gmra.mrb[4].mxu0 %v2339_v23  ;;  %976 = vmatmul.mubr.bf16.gmra.mrb[4].mxu1 %v2340_v24 }
  0xd2   : > { %855 = vmatprep.mubr.bf16.mxu0 %v2341_v25  ;;  %983 = vmatprep.mubr.bf16.mxu1 %v2343_v26 }
  0xd9   : > { %856 = vmatmul.mubr.bf16.gmra.mrb[8].mxu0 %v2345_v27  ;;  %984 = vmatmul.mubr.bf16.gmra.mrb[8].mxu1 %v2346_v28 }
  0xda   : > { %863 = vmatprep.mubr.bf16.mxu0 %v2347_v29  ;;  %991 = vmatprep.mubr.bf16.mxu1 %v2349_v30 }
  0xe1   : > { %864 = vmatmul.mubr.bf16.gmra.mrb[12].mxu0 %v2351_v31  ;;  %992 = vmatmul.mubr.bf16.gmra.mrb[12].mxu1 %v2352_v32 }
  0xe2   : > { %871 = vmatprep.mubr.bf16.mxu0 %v2353_v33  ;;  %999 = vmatprep.mubr.bf16.mxu1 %v2355_v34 }
  0xe9   : > { %872 = vmatmul.mubr.bf16.gmra.mrb[16].mxu0 %v2357_v35  ;;  %1000 = vmatmul.mubr.bf16.gmra.mrb[16].mxu1 %v2358_v36 }
  0xea   : > { %879 = vmatprep.mubr.bf16.mxu0 %v2359_v37  ;;  %1007 = vmatprep.mubr.bf16.mxu1 %v2361_v38 }
  0xf1   : > { %880 = vmatmul.mubr.bf16.gmra.mrb[20].mxu0 %v2363_v39  ;;  %1008 = vmatmul.mubr.bf16.gmra.mrb[20].mxu1 %v2364_v40 }
  0xf2   : > { %887 = vmatprep.mubr.bf16.mxu0 %v2365_v41  ;;  %1015 = vmatprep.mubr.bf16.mxu1 %v2367_v42 }
  0xf9   : > { %888 = vmatmul.mubr.bf16.gmra.mrb[24].mxu0 %v2369_v43  ;;  %1016 = vmatmul.mubr.bf16.gmra.mrb[24].mxu1 %v2370_v44 }
  0xfa   : > { %895 = vmatprep.mubr.bf16.mxu0 %v2371_v45  ;;  %1023 = vmatprep.mubr.bf16.mxu1 %v2373_v46 }
 0x101   : > { %896 = vmatmul.mubr.bf16.gmra.mrb[28].mxu0 %v2375_v47  ;;  %1024 = vmatmul.mubr.bf16.gmra.mrb[28].mxu1 %v2376_v48 }
 0x102   : > { %903 = vmatprep.mubr.bf16.mxu0 %v2377_v49  ;;  %1031 = vmatprep.mubr.bf16.mxu1 %v2379_v50 }
 0x109   : > { %904 = vmatmul.mubr.bf16.gmra.mrb[32].mxu0 %v2381_v51  ;;  %1032 = vmatmul.mubr.bf16.gmra.mrb[32].mxu1 %v2382_v52 }
 0x10a   : > { %911 = vmatprep.mubr.bf16.mxu0 %v2383_v53  ;;  %1039 = vmatprep.mubr.bf16.mxu1 %v2385_v54 }
 0x111   : > { %912 = vmatmul.mubr.bf16.gmra.mrb[36].mxu0 %v2387_v55  ;;  %1040 = vmatmul.mubr.bf16.gmra.mrb[36].mxu1 %v2388_v56 }
 0x112   : > { %919 = vmatprep.mubr.bf16.mxu0 %v2389_v57  ;;  %1047 = vmatprep.mubr.bf16.mxu1 %v2391_v58 }
 0x119   : > { %920 = vmatmul.mubr.bf16.gmra.mrb[40].mxu0 %v2393_v59  ;;  %1048 = vmatmul.mubr.bf16.gmra.mrb[40].mxu1 %v2394_v60 }
 0x11a   : > { %927 = vmatprep.mubr.bf16.mxu0 %v2395_v61  ;;  %1055 = vmatprep.mubr.bf16.mxu1 %v2397_v62 }
 0x121   : > { %928 = vmatmul.mubr.bf16.gmra.mrb[44].mxu0 %v2399_v63  ;;  %1056 = vmatmul.mubr.bf16.gmra.mrb[44].mxu1 %v2400_v0 }
 0x122   : > { %935 = vmatprep.mubr.bf16.mxu0 %v2401_v1  ;;  %1063 = vmatprep.mubr.bf16.mxu1 %v2403_v2 }
 0x129   : > { %936 = vmatmul.mubr.bf16.gmra.mrb[48].mxu0 %v2405_v3  ;;  %1064 = vmatmul.mubr.bf16.gmra.mrb[48].mxu1 %v2406_v4 }
 0x12a   : > { %943 = vmatprep.mubr.bf16.mxu0 %v2407_v5  ;;  %1071 = vmatprep.mubr.bf16.mxu1 %v2409_v6 }
 0x131   : > { %944 = vmatmul.mubr.bf16.gmra.mrb[52].mxu0 %v2411_v7  ;;  %1072 = vmatmul.mubr.bf16.gmra.mrb[52].mxu1 %v2412_v8 }
 0x132   : > { %951 = vmatprep.mubr.bf16.mxu0 %v2413_v9  ;;  %1079 = vmatprep.mubr.bf16.mxu1 %v2415_v10 }
 0x139   : > { %952 = vmatmul.mubr.bf16.gmra.mrb[56].mxu0 %v2417_v11  ;;  %1080 = vmatmul.mubr.bf16.gmra.mrb[56].mxu1 %v2418_v12 }
 0x13a   : > { %959 = vmatprep.mubr.bf16.mxu0 %v2419_v13  ;;  %1087 = vmatprep.mubr.bf16.mxu1 %v2421_v14 }
 0x141   : > { %960 = vmatmul.mubr.bf16.gmra.mrb[60].mxu0 %v2423_v15  ;;  %1088 = vmatmul.mubr.bf16.gmra.mrb[60].mxu1 %v2424_v16 }
 0x19c   : > { %v841_v18 = vpop.f32.mrb[0].mxu0  ;;  %v969_v20 = vpop.f32.mrb[0].mxu1 }
 0x19d   : > { %v1103_v21 = vmul.f32 %v2991_v17, %v841_v18  ;;  %v1135_v22 = vmul.f32 %v2991_v17, %v969_v20  ;;  %v843_v23 = vpop.f32.mrb[1].mxu0  ;;  %v971_v24 = vpop.f32.mrb[1].mxu1 }
 0x19e   : > { %v844_v25 = vpop.f32.mrb[2].mxu0  ;;  %v972_v26 = vpop.f32.mrb[2].mxu1 }
 0x19f   : > { %v1174_v27 = vadd.f32 %v2993_v19, %v1103_v21  ;;  %v1206_v28 = vadd.f32 %v2993_v19, %v1135_v22  ;;  %v1104_v29 = vmul.f32 %v2991_v17, %v844_v25  ;;  %v1136_v30 = vmul.f32 %v2991_v17, %v972_v26  ;;  %v846_v31 = vpop.f32.mrb[3].mxu0  ;;  %v974_v32 = vpop.f32.mrb[3].mxu1 }
 0x1a1   : > { %v1175_v33 = vadd.f32 %v2993_v19, %v1104_v29  ;;  %v1207_v34 = vadd.f32 %v2993_v19, %v1136_v30  ;;  %v1238_v35 = vmax.f32 %v1174_v27, 0.0  ;;  %v1270_v36 = vmax.f32 %v1206_v28, 0.0 }
 0x1a3   : > { %v1239_v37 = vmax.f32 %v1175_v33, 0.0  ;;  %v1271_v38 = vmax.f32 %v1207_v34, 0.0 }
 0x1a4   : > { %v849_v39 = vpop.f32.mrb[4].mxu0  ;;  %v977_v40 = vpop.f32.mrb[4].mxu1 }
 0x1a5   : > { %v1993_v41 = vpack.c.bf16 %v1239_v37, %v1238_v35  ;;  %v2073_v42 = vpack.c.bf16 %v1271_v38, %v1270_v36  ;;  %v1105_v43 = vmul.f32 %v2991_v17, %v849_v39  ;;  %v1137_v44 = vmul.f32 %v2991_v17, %v977_v40  ;;  %v851_v45 = vpop.f32.mrb[5].mxu0  ;;  %v979_v46 = vpop.f32.mrb[5].mxu1 }
 0x1a6   : > { %v852_v47 = vpop.f32.mrb[6].mxu0  ;;  %v980_v48 = vpop.f32.mrb[6].mxu1 }
 0x1a7   : > { %1994 = vst [vmem:[%s3006_s25] sm:$0xff] %v1993_v41   ;;  %2165 = vst [vmem:[%s3006_s25 + $0x80] sm:$0xff] %v2073_v42   ;;  %v1176_v49 = vadd.f32 %v2993_v19, %v1105_v43  ;;  %v1208_v50 = vadd.f32 %v2993_v19, %v1137_v44  ;;  %v1106_v51 = vmul.f32 %v2991_v17, %v852_v47  ;;  %v854_v53 = vpop.f32.mrb[7].mxu0  ;;  %v982_v54 = vpop.f32.mrb[7].mxu1 }
 0x1a8   : > { %v1138_v52 = vmul.f32 %v2991_v17, %v980_v48 }
 0x1a9   : > { %v1177_v55 = vadd.f32 %v2993_v19, %v1106_v51  ;;  %v1240_v57 = vmax.f32 %v1176_v49, 0.0  ;;  %v1272_v58 = vmax.f32 %v1208_v50, 0.0 }
 0x1aa   : > { %v1209_v56 = vadd.f32 %v2993_v19, %v1138_v52 }
 0x1ab   : > { %v1241_v59 = vmax.f32 %v1177_v55, 0.0 }
 0x1ac   : > { %v1273_v60 = vmax.f32 %v1209_v56, 0.0  ;;  %v857_v61 = vpop.f32.mrb[8].mxu0  ;;  %v985_v62 = vpop.f32.mrb[8].mxu1 }
 0x1ad   : > { %v1998_v63 = vpack.c.bf16 %v1241_v59, %v1240_v57  ;;  %v1107_v1 = vmul.f32 %v2991_v17, %v857_v61  ;;  %v1139_v2 = vmul.f32 %v2991_v17, %v985_v62  ;;  %v859_v3 = vpop.f32.mrb[9].mxu0  ;;  %v987_v4 = vpop.f32.mrb[9].mxu1 }
 0x1ae   : > { %v2078_v0 = vpack.c.bf16 %v1273_v60, %v1272_v58  ;;  %v860_v5 = vpop.f32.mrb[10].mxu0  ;;  %v988_v6 = vpop.f32.mrb[10].mxu1 }
 0x1af   : > { %2150 = vst [vmem:[%s3006_s25 + $0x8] sm:$0xff] %v1998_v63   ;;  %v1178_v7 = vadd.f32 %v2993_v19, %v1107_v1  ;;  %v1210_v8 = vadd.f32 %v2993_v19, %v1139_v2  ;;  %v1108_v9 = vmul.f32 %v2991_v17, %v860_v5  ;;  %v1140_v10 = vmul.f32 %v2991_v17, %v988_v6  ;;  %v862_v11 = vpop.f32.mrb[11].mxu0  ;;  %v990_v12 = vpop.f32.mrb[11].mxu1 }
 0x1b0   : > { %2166 = vst [vmem:[%s3006_s25 + $0x88] sm:$0xff] %v2078_v0  }
 0x1b1   : > { %v1179_v13 = vadd.f32 %v2993_v19, %v1108_v9  ;;  %v1211_v14 = vadd.f32 %v2993_v19, %v1140_v10  ;;  %v1242_v15 = vmax.f32 %v1178_v7, 0.0  ;;  %v1274_v16 = vmax.f32 %v1210_v8, 0.0 }
 0x1b3   : > { %v1243_v18 = vmax.f32 %v1179_v13, 0.0  ;;  %v1275_v20 = vmax.f32 %v1211_v14, 0.0 }
 0x1b4   : > { %v865_v21 = vpop.f32.mrb[12].mxu0  ;;  %v993_v22 = vpop.f32.mrb[12].mxu1 }
 0x1b5   : > { %v2003_v23 = vpack.c.bf16 %v1243_v18, %v1242_v15  ;;  %v2083_v24 = vpack.c.bf16 %v1275_v20, %v1274_v16  ;;  %v1109_v25 = vmul.f32 %v2991_v17, %v865_v21  ;;  %v1141_v26 = vmul.f32 %v2991_v17, %v993_v22  ;;  %v867_v27 = vpop.f32.mrb[13].mxu0  ;;  %v995_v28 = vpop.f32.mrb[13].mxu1 }
 0x1b6   : > { %v868_v29 = vpop.f32.mrb[14].mxu0  ;;  %v996_v30 = vpop.f32.mrb[14].mxu1 }
 0x1b7   : > { %2151 = vst [vmem:[%s3006_s25 + $0x10] sm:$0xff] %v2003_v23   ;;  %2167 = vst [vmem:[%s3006_s25 + $0x90] sm:$0xff] %v2083_v24   ;;  %v1180_v31 = vadd.f32 %v2993_v19, %v1109_v25  ;;  %v1212_v32 = vadd.f32 %v2993_v19, %v1141_v26  ;;  %v1110_v33 = vmul.f32 %v2991_v17, %v868_v29  ;;  %v870_v35 = vpop.f32.mrb[15].mxu0  ;;  %v998_v36 = vpop.f32.mrb[15].mxu1 }
 0x1b8   : > { %v1142_v34 = vmul.f32 %v2991_v17, %v996_v30 }
 0x1b9   : > { %v1181_v37 = vadd.f32 %v2993_v19, %v1110_v33  ;;  %v1244_v39 = vmax.f32 %v1180_v31, 0.0  ;;  %v1276_v40 = vmax.f32 %v1212_v32, 0.0 }
 0x1ba   : > { %v1213_v38 = vadd.f32 %v2993_v19, %v1142_v34 }
 0x1bb   : > { %v1245_v41 = vmax.f32 %v1181_v37, 0.0 }
 0x1bc   : > { %v1277_v42 = vmax.f32 %v1213_v38, 0.0  ;;  %v873_v43 = vpop.f32.mrb[16].mxu0  ;;  %v1001_v44 = vpop.f32.mrb[16].mxu1 }
 0x1bd   : > { %v2008_v45 = vpack.c.bf16 %v1245_v41, %v1244_v39  ;;  %v1111_v47 = vmul.f32 %v2991_v17, %v873_v43  ;;  %v1143_v48 = vmul.f32 %v2991_v17, %v1001_v44  ;;  %v875_v49 = vpop.f32.mrb[17].mxu0  ;;  %v1003_v50 = vpop.f32.mrb[17].mxu1 }
 0x1be   : > { %v2088_v46 = vpack.c.bf16 %v1277_v42, %v1276_v40  ;;  %v876_v51 = vpop.f32.mrb[18].mxu0  ;;  %v1004_v52 = vpop.f32.mrb[18].mxu1 }
 0x1bf   : > { %2152 = vst [vmem:[%s3006_s25 + $0x18] sm:$0xff] %v2008_v45   ;;  %v1182_v53 = vadd.f32 %v2993_v19, %v1111_v47  ;;  %v1214_v54 = vadd.f32 %v2993_v19, %v1143_v48  ;;  %v1112_v55 = vmul.f32 %v2991_v17, %v876_v51  ;;  %v1144_v56 = vmul.f32 %v2991_v17, %v1004_v52  ;;  %v878_v57 = vpop.f32.mrb[19].mxu0  ;;  %v1006_v58 = vpop.f32.mrb[19].mxu1 }
 0x1c0   : > { %2168 = vst [vmem:[%s3006_s25 + $0x98] sm:$0xff] %v2088_v46  }
 0x1c1   : > { %v1183_v59 = vadd.f32 %v2993_v19, %v1112_v55  ;;  %v1215_v60 = vadd.f32 %v2993_v19, %v1144_v56  ;;  %v1246_v61 = vmax.f32 %v1182_v53, 0.0  ;;  %v1278_v62 = vmax.f32 %v1214_v54, 0.0 }
 0x1c3   : > { %v1247_v63 = vmax.f32 %v1183_v59, 0.0  ;;  %v1279_v0 = vmax.f32 %v1215_v60, 0.0 }
 0x1c4   : > { %v881_v1 = vpop.f32.mrb[20].mxu0  ;;  %v1009_v2 = vpop.f32.mrb[20].mxu1 }
 0x1c5   : > { %v2013_v3 = vpack.c.bf16 %v1247_v63, %v1246_v61  ;;  %v2093_v4 = vpack.c.bf16 %v1279_v0, %v1278_v62  ;;  %v1113_v5 = vmul.f32 %v2991_v17, %v881_v1  ;;  %v1145_v6 = vmul.f32 %v2991_v17, %v1009_v2  ;;  %v883_v7 = vpop.f32.mrb[21].mxu0  ;;  %v1011_v8 = vpop.f32.mrb[21].mxu1 }
 0x1c6   : > { %v884_v9 = vpop.f32.mrb[22].mxu0  ;;  %v1012_v10 = vpop.f32.mrb[22].mxu1 }
 0x1c7   : > { %2153 = vst [vmem:[%s3006_s25 + $0x20] sm:$0xff] %v2013_v3   ;;  %2169 = vst [vmem:[%s3006_s25 + $0xa0] sm:$0xff] %v2093_v4   ;;  %v1184_v11 = vadd.f32 %v2993_v19, %v1113_v5  ;;  %v1216_v12 = vadd.f32 %v2993_v19, %v1145_v6  ;;  %v1114_v13 = vmul.f32 %v2991_v17, %v884_v9  ;;  %v886_v15 = vpop.f32.mrb[23].mxu0  ;;  %v1014_v16 = vpop.f32.mrb[23].mxu1 }
 0x1c8   : > { %v1146_v14 = vmul.f32 %v2991_v17, %v1012_v10 }
 0x1c9   : > { %v1185_v18 = vadd.f32 %v2993_v19, %v1114_v13  ;;  %v1248_v21 = vmax.f32 %v1184_v11, 0.0  ;;  %v1280_v22 = vmax.f32 %v1216_v12, 0.0 }
 0x1ca   : > { %v1217_v20 = vadd.f32 %v2993_v19, %v1146_v14 }
 0x1cb   : > { %v1249_v23 = vmax.f32 %v1185_v18, 0.0 }
 0x1cc   : > { %v1281_v24 = vmax.f32 %v1217_v20, 0.0  ;;  %v889_v25 = vpop.f32.mrb[24].mxu0  ;;  %v1017_v26 = vpop.f32.mrb[24].mxu1 }
 0x1cd   : > { %v2018_v27 = vpack.c.bf16 %v1249_v23, %v1248_v21  ;;  %v1115_v29 = vmul.f32 %v2991_v17, %v889_v25  ;;  %v1147_v30 = vmul.f32 %v2991_v17, %v1017_v26  ;;  %v891_v31 = vpop.f32.mrb[25].mxu0  ;;  %v1019_v32 = vpop.f32.mrb[25].mxu1 }
 0x1ce   : > { %v2098_v28 = vpack.c.bf16 %v1281_v24, %v1280_v22  ;;  %v892_v33 = vpop.f32.mrb[26].mxu0  ;;  %v1020_v34 = vpop.f32.mrb[26].mxu1 }
 0x1cf   : > { %2154 = vst [vmem:[%s3006_s25 + $0x28] sm:$0xff] %v2018_v27   ;;  %v1186_v35 = vadd.f32 %v2993_v19, %v1115_v29  ;;  %v1218_v36 = vadd.f32 %v2993_v19, %v1147_v30  ;;  %v1116_v37 = vmul.f32 %v2991_v17, %v892_v33  ;;  %v1148_v38 = vmul.f32 %v2991_v17, %v1020_v34  ;;  %v894_v39 = vpop.f32.mrb[27].mxu0  ;;  %v1022_v40 = vpop.f32.mrb[27].mxu1 }
 0x1d0   : > { %2170 = vst [vmem:[%s3006_s25 + $0xa8] sm:$0xff] %v2098_v28  }
 0x1d1   : > { %v1187_v41 = vadd.f32 %v2993_v19, %v1116_v37  ;;  %v1219_v42 = vadd.f32 %v2993_v19, %v1148_v38  ;;  %v1250_v43 = vmax.f32 %v1186_v35, 0.0  ;;  %v1282_v44 = vmax.f32 %v1218_v36, 0.0 }
 0x1d3   : > { %v1251_v45 = vmax.f32 %v1187_v41, 0.0  ;;  %v1283_v46 = vmax.f32 %v1219_v42, 0.0 }
 0x1d4   : > { %v897_v47 = vpop.f32.mrb[28].mxu0  ;;  %v1025_v48 = vpop.f32.mrb[28].mxu1 }
 0x1d5   : > { %v2023_v49 = vpack.c.bf16 %v1251_v45, %v1250_v43  ;;  %v2103_v50 = vpack.c.bf16 %v1283_v46, %v1282_v44  ;;  %v1117_v51 = vmul.f32 %v2991_v17, %v897_v47  ;;  %v1149_v52 = vmul.f32 %v2991_v17, %v1025_v48  ;;  %v899_v53 = vpop.f32.mrb[29].mxu0  ;;  %v1027_v54 = vpop.f32.mrb[29].mxu1 }
 0x1d6   : > { %v900_v55 = vpop.f32.mrb[30].mxu0  ;;  %v1028_v56 = vpop.f32.mrb[30].mxu1 }
 0x1d7   : > { %2155 = vst [vmem:[%s3006_s25 + $0x30] sm:$0xff] %v2023_v49   ;;  %2171 = vst [vmem:[%s3006_s25 + $0xb0] sm:$0xff] %v2103_v50   ;;  %v1188_v57 = vadd.f32 %v2993_v19, %v1117_v51  ;;  %v1220_v58 = vadd.f32 %v2993_v19, %v1149_v52  ;;  %v1118_v59 = vmul.f32 %v2991_v17, %v900_v55  ;;  %v902_v61 = vpop.f32.mrb[31].mxu0  ;;  %v1030_v62 = vpop.f32.mrb[31].mxu1 }
 0x1d8   : > { %v1150_v60 = vmul.f32 %v2991_v17, %v1028_v56 }
 0x1d9   : > { %v1189_v63 = vadd.f32 %v2993_v19, %v1118_v59  ;;  %v1252_v1 = vmax.f32 %v1188_v57, 0.0  ;;  %v1284_v2 = vmax.f32 %v1220_v58, 0.0 }
 0x1da   : > { %v1221_v0 = vadd.f32 %v2993_v19, %v1150_v60 }
 0x1db   : > { %v1253_v3 = vmax.f32 %v1189_v63, 0.0 }
 0x1dc   : > { %v1285_v4 = vmax.f32 %v1221_v0, 0.0  ;;  %v905_v5 = vpop.f32.mrb[32].mxu0  ;;  %v1033_v6 = vpop.f32.mrb[32].mxu1 }
 0x1dd   : > { %v2028_v7 = vpack.c.bf16 %v1253_v3, %v1252_v1  ;;  %v1119_v9 = vmul.f32 %v2991_v17, %v905_v5  ;;  %v1151_v10 = vmul.f32 %v2991_v17, %v1033_v6  ;;  %v907_v11 = vpop.f32.mrb[33].mxu0  ;;  %v1035_v12 = vpop.f32.mrb[33].mxu1 }
 0x1de   : > { %v2108_v8 = vpack.c.bf16 %v1285_v4, %v1284_v2  ;;  %v908_v13 = vpop.f32.mrb[34].mxu0  ;;  %v1036_v14 = vpop.f32.mrb[34].mxu1 }
 0x1df   : > { %2156 = vst [vmem:[%s3006_s25 + $0x38] sm:$0xff] %v2028_v7   ;;  %v1190_v15 = vadd.f32 %v2993_v19, %v1119_v9  ;;  %v1222_v16 = vadd.f32 %v2993_v19, %v1151_v10  ;;  %v1120_v18 = vmul.f32 %v2991_v17, %v908_v13  ;;  %v1152_v20 = vmul.f32 %v2991_v17, %v1036_v14  ;;  %v910_v21 = vpop.f32.mrb[35].mxu0  ;;  %v1038_v22 = vpop.f32.mrb[35].mxu1 }
 0x1e0   : > { %2172 = vst [vmem:[%s3006_s25 + $0xb8] sm:$0xff] %v2108_v8  }
 0x1e1   : > { %v1191_v23 = vadd.f32 %v2993_v19, %v1120_v18  ;;  %v1223_v24 = vadd.f32 %v2993_v19, %v1152_v20  ;;  %v1254_v25 = vmax.f32 %v1190_v15, 0.0  ;;  %v1286_v26 = vmax.f32 %v1222_v16, 0.0 }
 0x1e3   : > { %v1255_v27 = vmax.f32 %v1191_v23, 0.0  ;;  %v1287_v28 = vmax.f32 %v1223_v24, 0.0 }
 0x1e4   : > { %v913_v29 = vpop.f32.mrb[36].mxu0  ;;  %v1041_v30 = vpop.f32.mrb[36].mxu1 }
 0x1e5   : > { %v2033_v31 = vpack.c.bf16 %v1255_v27, %v1254_v25  ;;  %v2113_v32 = vpack.c.bf16 %v1287_v28, %v1286_v26  ;;  %v1121_v33 = vmul.f32 %v2991_v17, %v913_v29  ;;  %v1153_v34 = vmul.f32 %v2991_v17, %v1041_v30  ;;  %v915_v35 = vpop.f32.mrb[37].mxu0  ;;  %v1043_v36 = vpop.f32.mrb[37].mxu1 }
 0x1e6   : > { %v916_v37 = vpop.f32.mrb[38].mxu0  ;;  %v1044_v38 = vpop.f32.mrb[38].mxu1 }
 0x1e7   : > { %2157 = vst [vmem:[%s3006_s25 + $0x40] sm:$0xff] %v2033_v31   ;;  %2173 = vst [vmem:[%s3006_s25 + $0xc0] sm:$0xff] %v2113_v32   ;;  %v1192_v39 = vadd.f32 %v2993_v19, %v1121_v33  ;;  %v1224_v40 = vadd.f32 %v2993_v19, %v1153_v34  ;;  %v1122_v41 = vmul.f32 %v2991_v17, %v916_v37  ;;  %v918_v43 = vpop.f32.mrb[39].mxu0  ;;  %v1046_v44 = vpop.f32.mrb[39].mxu1 }
 0x1e8   : > { %v1154_v42 = vmul.f32 %v2991_v17, %v1044_v38 }
 0x1e9   : > { %v1193_v45 = vadd.f32 %v2993_v19, %v1122_v41  ;;  %v1256_v47 = vmax.f32 %v1192_v39, 0.0  ;;  %v1288_v48 = vmax.f32 %v1224_v40, 0.0 }
 0x1ea   : > { %v1225_v46 = vadd.f32 %v2993_v19, %v1154_v42 }
 0x1eb   : > { %v1257_v49 = vmax.f32 %v1193_v45, 0.0 }
 0x1ec   : > { %v1289_v50 = vmax.f32 %v1225_v46, 0.0  ;;  %v921_v51 = vpop.f32.mrb[40].mxu0  ;;  %v1049_v52 = vpop.f32.mrb[40].mxu1 }
 0x1ed   : > { %v2038_v53 = vpack.c.bf16 %v1257_v49, %v1256_v47  ;;  %v1123_v55 = vmul.f32 %v2991_v17, %v921_v51  ;;  %v1155_v56 = vmul.f32 %v2991_v17, %v1049_v52  ;;  %v923_v57 = vpop.f32.mrb[41].mxu0  ;;  %v1051_v58 = vpop.f32.mrb[41].mxu1 }
 0x1ee   : > { %v2118_v54 = vpack.c.bf16 %v1289_v50, %v1288_v48  ;;  %v924_v59 = vpop.f32.mrb[42].mxu0  ;;  %v1052_v60 = vpop.f32.mrb[42].mxu1 }
 0x1ef   : > { %2158 = vst [vmem:[%s3006_s25 + $0x48] sm:$0xff] %v2038_v53   ;;  %v1194_v61 = vadd.f32 %v2993_v19, %v1123_v55  ;;  %v1226_v62 = vadd.f32 %v2993_v19, %v1155_v56  ;;  %v1124_v63 = vmul.f32 %v2991_v17, %v924_v59  ;;  %v1156_v0 = vmul.f32 %v2991_v17, %v1052_v60  ;;  %v926_v1 = vpop.f32.mrb[43].mxu0  ;;  %v1054_v2 = vpop.f32.mrb[43].mxu1 }
 0x1f0   : > { %2174 = vst [vmem:[%s3006_s25 + $0xc8] sm:$0xff] %v2118_v54  }
 0x1f1   : > { %v1195_v3 = vadd.f32 %v2993_v19, %v1124_v63  ;;  %v1227_v4 = vadd.f32 %v2993_v19, %v1156_v0  ;;  %v1258_v5 = vmax.f32 %v1194_v61, 0.0  ;;  %v1290_v6 = vmax.f32 %v1226_v62, 0.0 }
 0x1f3   : > { %v1259_v7 = vmax.f32 %v1195_v3, 0.0  ;;  %v1291_v8 = vmax.f32 %v1227_v4, 0.0 }
 0x1f4   : > { %v929_v9 = vpop.f32.mrb[44].mxu0  ;;  %v1057_v10 = vpop.f32.mrb[44].mxu1 }
 0x1f5   : > { %v2043_v11 = vpack.c.bf16 %v1259_v7, %v1258_v5  ;;  %v2123_v12 = vpack.c.bf16 %v1291_v8, %v1290_v6  ;;  %v1125_v13 = vmul.f32 %v2991_v17, %v929_v9  ;;  %v1157_v14 = vmul.f32 %v2991_v17, %v1057_v10  ;;  %v931_v15 = vpop.f32.mrb[45].mxu0  ;;  %v1059_v16 = vpop.f32.mrb[45].mxu1 }
 0x1f6   : > { %v932_v18 = vpop.f32.mrb[46].mxu0  ;;  %v1060_v20 = vpop.f32.mrb[46].mxu1 }
 0x1f7   : > { %2159 = vst [vmem:[%s3006_s25 + $0x50] sm:$0xff] %v2043_v11   ;;  %2175 = vst [vmem:[%s3006_s25 + $0xd0] sm:$0xff] %v2123_v12   ;;  %v1196_v21 = vadd.f32 %v2993_v19, %v1125_v13  ;;  %v1228_v22 = vadd.f32 %v2993_v19, %v1157_v14  ;;  %v1126_v23 = vmul.f32 %v2991_v17, %v932_v18  ;;  %v934_v25 = vpop.f32.mrb[47].mxu0  ;;  %v1062_v26 = vpop.f32.mrb[47].mxu1 }
 0x1f8   : > { %v1158_v24 = vmul.f32 %v2991_v17, %v1060_v20 }
 0x1f9   : > { %v1197_v27 = vadd.f32 %v2993_v19, %v1126_v23  ;;  %v1260_v29 = vmax.f32 %v1196_v21, 0.0  ;;  %v1292_v30 = vmax.f32 %v1228_v22, 0.0 }
 0x1fa   : > { %v1229_v28 = vadd.f32 %v2993_v19, %v1158_v24 }
 0x1fb   : > { %v1261_v31 = vmax.f32 %v1197_v27, 0.0 }
 0x1fc   : > { %v1293_v32 = vmax.f32 %v1229_v28, 0.0  ;;  %v937_v33 = vpop.f32.mrb[48].mxu0  ;;  %v1065_v34 = vpop.f32.mrb[48].mxu1 }
 0x1fd   : > { %v2048_v35 = vpack.c.bf16 %v1261_v31, %v1260_v29  ;;  %v1127_v37 = vmul.f32 %v2991_v17, %v937_v33  ;;  %v1159_v38 = vmul.f32 %v2991_v17, %v1065_v34  ;;  %v939_v39 = vpop.f32.mrb[49].mxu0  ;;  %v1067_v40 = vpop.f32.mrb[49].mxu1 }
 0x1fe   : > { %v2128_v36 = vpack.c.bf16 %v1293_v32, %v1292_v30  ;;  %v940_v41 = vpop.f32.mrb[50].mxu0  ;;  %v1068_v42 = vpop.f32.mrb[50].mxu1 }
 0x1ff   : > { %2160 = vst [vmem:[%s3006_s25 + $0x58] sm:$0xff] %v2048_v35   ;;  %v1198_v43 = vadd.f32 %v2993_v19, %v1127_v37  ;;  %v1230_v44 = vadd.f32 %v2993_v19, %v1159_v38  ;;  %v1128_v45 = vmul.f32 %v2991_v17, %v940_v41  ;;  %v1160_v46 = vmul.f32 %v2991_v17, %v1068_v42  ;;  %v942_v47 = vpop.f32.mrb[51].mxu0  ;;  %v1070_v48 = vpop.f32.mrb[51].mxu1 }
 0x200   : > { %2176 = vst [vmem:[%s3006_s25 + $0xd8] sm:$0xff] %v2128_v36  }
 0x201   : > { %v1199_v49 = vadd.f32 %v2993_v19, %v1128_v45  ;;  %v1231_v50 = vadd.f32 %v2993_v19, %v1160_v46  ;;  %v1262_v51 = vmax.f32 %v1198_v43, 0.0  ;;  %v1294_v52 = vmax.f32 %v1230_v44, 0.0 }
 0x203   : > { %v1263_v53 = vmax.f32 %v1199_v49, 0.0  ;;  %v1295_v54 = vmax.f32 %v1231_v50, 0.0 }
 0x204   : > { %v945_v55 = vpop.f32.mrb[52].mxu0  ;;  %v1073_v56 = vpop.f32.mrb[52].mxu1 }
 0x205   : > { %v2053_v57 = vpack.c.bf16 %v1263_v53, %v1262_v51  ;;  %v2133_v58 = vpack.c.bf16 %v1295_v54, %v1294_v52  ;;  %v1129_v59 = vmul.f32 %v2991_v17, %v945_v55  ;;  %v1161_v60 = vmul.f32 %v2991_v17, %v1073_v56  ;;  %v947_v61 = vpop.f32.mrb[53].mxu0  ;;  %v1075_v62 = vpop.f32.mrb[53].mxu1 }
 0x206   : > { %v948_v63 = vpop.f32.mrb[54].mxu0  ;;  %v1076_v0 = vpop.f32.mrb[54].mxu1 }
 0x207   : > { %2161 = vst [vmem:[%s3006_s25 + $0x60] sm:$0xff] %v2053_v57   ;;  %2177 = vst [vmem:[%s3006_s25 + $0xe0] sm:$0xff] %v2133_v58   ;;  %v1200_v1 = vadd.f32 %v2993_v19, %v1129_v59  ;;  %v1232_v2 = vadd.f32 %v2993_v19, %v1161_v60  ;;  %v1130_v3 = vmul.f32 %v2991_v17, %v948_v63  ;;  %v950_v5 = vpop.f32.mrb[55].mxu0  ;;  %v1078_v6 = vpop.f32.mrb[55].mxu1 }
 0x208   : > { %v1162_v4 = vmul.f32 %v2991_v17, %v1076_v0 }
 0x209   : > { %v1201_v7 = vadd.f32 %v2993_v19, %v1130_v3  ;;  %v1264_v9 = vmax.f32 %v1200_v1, 0.0  ;;  %v1296_v10 = vmax.f32 %v1232_v2, 0.0 }
 0x20a   : > { %v1233_v8 = vadd.f32 %v2993_v19, %v1162_v4 }
 0x20b   : > { %v1265_v11 = vmax.f32 %v1201_v7, 0.0 }
 0x20c   : > { %v1297_v12 = vmax.f32 %v1233_v8, 0.0  ;;  %v953_v13 = vpop.f32.mrb[56].mxu0  ;;  %v1081_v14 = vpop.f32.mrb[56].mxu1 }
 0x20d   : > { %v2058_v15 = vpack.c.bf16 %v1265_v11, %v1264_v9  ;;  %v1131_v18 = vmul.f32 %v2991_v17, %v953_v13  ;;  %v1163_v20 = vmul.f32 %v2991_v17, %v1081_v14  ;;  %v955_v21 = vpop.f32.mrb[57].mxu0  ;;  %v1083_v22 = vpop.f32.mrb[57].mxu1 }
 0x20e   : > { %v2138_v16 = vpack.c.bf16 %v1297_v12, %v1296_v10  ;;  %v956_v23 = vpop.f32.mrb[58].mxu0  ;;  %v1084_v24 = vpop.f32.mrb[58].mxu1 }
 0x20f   : > { %2162 = vst [vmem:[%s3006_s25 + $0x68] sm:$0xff] %v2058_v15   ;;  %v1202_v25 = vadd.f32 %v2993_v19, %v1131_v18  ;;  %v1234_v26 = vadd.f32 %v2993_v19, %v1163_v20  ;;  %v1132_v27 = vmul.f32 %v2991_v17, %v956_v23  ;;  %v1164_v28 = vmul.f32 %v2991_v17, %v1084_v24  ;;  %v958_v29 = vpop.f32.mrb[59].mxu0  ;;  %v1086_v30 = vpop.f32.mrb[59].mxu1 }
 0x210   : > { %2178 = vst [vmem:[%s3006_s25 + $0xe8] sm:$0xff] %v2138_v16  }
 0x211   : > { %v1203_v31 = vadd.f32 %v2993_v19, %v1132_v27  ;;  %v1235_v32 = vadd.f32 %v2993_v19, %v1164_v28  ;;  %v1266_v33 = vmax.f32 %v1202_v25, 0.0  ;;  %v1298_v34 = vmax.f32 %v1234_v26, 0.0 }
 0x213   : > { %v1267_v35 = vmax.f32 %v1203_v31, 0.0  ;;  %v1299_v36 = vmax.f32 %v1235_v32, 0.0 }
 0x214   : > { %v961_v37 = vpop.f32.mrb[60].mxu0  ;;  %v1089_v38 = vpop.f32.mrb[60].mxu1 }
 0x215   : > { %v2063_v39 = vpack.c.bf16 %v1267_v35, %v1266_v33  ;;  %v2143_v40 = vpack.c.bf16 %v1299_v36, %v1298_v34  ;;  %v1133_v41 = vmul.f32 %v2991_v17, %v961_v37  ;;  %v1165_v42 = vmul.f32 %v2991_v17, %v1089_v38  ;;  %v963_v43 = vpop.f32.mrb[61].mxu0  ;;  %v1091_v44 = vpop.f32.mrb[61].mxu1 }
 0x216   : > { %v964_v45 = vpop.f32.mrb[62].mxu0  ;;  %v1092_v46 = vpop.f32.mrb[62].mxu1 }
 0x217   : > { %2163 = vst [vmem:[%s3006_s25 + $0x70] sm:$0xff] %v2063_v39   ;;  %2179 = vst [vmem:[%s3006_s25 + $0xf0] sm:$0xff] %v2143_v40   ;;  %v1204_v47 = vadd.f32 %v2993_v19, %v1133_v41  ;;  %v1236_v48 = vadd.f32 %v2993_v19, %v1165_v42  ;;  %v1134_v49 = vmul.f32 %v2991_v17, %v964_v45  ;;  %v966_v51 = vpop.f32.mrb[63].mxu0  ;;  %v1094_v52 = vpop.f32.mrb[63].mxu1 }
 0x218   : > { %v1166_v50 = vmul.f32 %v2991_v17, %v1092_v46 }
 0x219   : > { %v1205_v53 = vadd.f32 %v2993_v19, %v1134_v49  ;;  %v1268_v55 = vmax.f32 %v1204_v47, 0.0  ;;  %v1300_v56 = vmax.f32 %v1236_v48, 0.0 }
 0x21a   : > { %v1237_v54 = vadd.f32 %v2993_v19, %v1166_v50 }
 0x21b   : > { %v1269_v57 = vmax.f32 %v1205_v53, 0.0 }
 0x21c   : > { %v1301_v58 = vmax.f32 %v1237_v54, 0.0 }
 0x21d   : > { %v2068_v17 = vpack.c.bf16 %v1269_v57, %v1268_v55 }
 0x21e   : > { %v2148_v59 = vpack.c.bf16 %v1301_v58, %v1300_v56 }
 0x21f   : > { %2164 = vst [vmem:[%s3006_s25 + $0x78] sm:$0xff] %v2068_v17  }
 0x220   : > { %2180 = vst [vmem:[%s3006_s25 + $0xf8] sm:$0xff] %v2148_v59  }
 0x221   : > { %2552 = shalt.err (!%p2549_p13)
}
 0x222   : > { %s2553_s29 = scalar_lea.hbm %s3161_s6, 4096  ;;  %s2557_s8 = scalar_lea.hbm %s3217_s4, 36864 }
 0x223   : > { %p2554_p4 = scmp.ne.s32.totalorder %s3161_s6, %s2553_s29  ;;  %p2558_p11 = scmp.lt.u32.totalorder %s3161_s6, %s3217_s4 }
 0x224   : > { %p2559_p1 = scmp.lt.u32.totalorder %s2557_s8, %s2553_s29  ;;  %p2561_p12 = scmp.lt.u32.totalorder %s2553_s29, %s3161_s6 }
 0x225   : > { %p2555_p2 = pnand %p2554_p4, %p2819_p0 }
 0x226   : > { %p2560_p10 = por %p2559_p1, %p2558_p11 }
 0x227   : > { %p2556_p8 = pneg %p2555_p2 }
 0x228   : > { %p2562_p6 = por %p2561_p12, %p2560_p10 }
 0x22a   : > { %p2563_p3 = pnand %p2562_p6, %p2556_p8 }
 0x22c   : > { %2566 = shalt.err (!%p2563_p3)
}
 0x22d   : > { %s2641_s25 = smov 64   ;;  %s2642_s27 = smov 4  }
 0x22e   : > { %2227 = dma.vmem_to_hbm [thread:$0]  (%p2819_p0), %s3163_s24, 4096, %s3161_s6, %s1623_s18, %s2641_s25, %s2641_s25, %s2642_s27  }
 0x22f PF: > { %s3237_s22 = sld [smem:[#allocation15_spill]]  ;;  %p2254_p5 = scmp.ge.s32.totalorder %s2629_s20, 2 }
 0x230   : > { %s1652_s28 = sand.u32 1, %s2609_s15  }
 0x231   : > { %s1653_s7 = scalar_lea.sflag [#allocation4], %s1652_s28 }
 0x235   : > { %p3238_p7 = scmp.ne.s32.totalorder %s3237_s22, 0 }
 0x237   : > { %p2244_p9 = pnand %p2254_p5, %p3238_p7 }
 0x239   : > { %2604 = dma.done.wait (!%p2244_p9), %s1653_s7, 4096  }
 0x23a   : > { %2606 = vsyncadd (!%p2244_p9), %s1653_s7, 4294963200  ;;  %s22_s20 = sadd.s32 1, %s2629_s20   ;;  %s3239_s15 = smov %s2613_s16 }
 0x23b   : > { %p19_p13 = scmp.ge.s32.totalorder %s22_s20, 11   ;;  %s3240_s16 = smov %s2617_s17 }
 0x23c   : > { %s3241_s17 = smov %s2831_s11  ;;  %s3242_s18 = smov %s2625_s19 }
 0x23d   : > { %s3243_s19 = smov %s3245_s26  ;;  %21 = sbr.rel (!%p19_p13) target bundleno = 8 (0x8), region = 96 }
 0x244   :  { %1658 = vsyncpa [#allocation3], 1 }
 0x245   :  { %1660 = vsyncpa [#allocation3 + $0x1], 1 }
 0x246   :  { %1661 = vsyncpa [#allocation6], 1 }
 0x247   :  { %1662 = vsyncpa [#allocation9], 1 }
 0x248   :  { %1663 = vsyncpa [#allocation4], 1 }
 0x249   :  { %1665 = vsyncpa [#allocation4 + $0x1], 1 }

</bundles_post_ra>
